<compile_context>
chip_gen: v5e
topology: v5e:2x2
jax: 0.10.0
libtpu: 0.0.40
codegen_flags: <defaults>
</compile_context>

<pallas_src>
import functools
import math

import jax
import jax.numpy as jnp
from jax.experimental import pallas as pl
from jax.experimental.pallas import tpu as pltpu

LN_EPS = 1e-12                      # BERT default layer_norm_eps
VMEM_LIMIT = 64 * 1024 * 1024       # explicit scoped-VMEM budget (v7x: 64 MiB phys)


# ----------------------------------------------------------------------------
# Tile picker (sublane-aligned row tiles; fallback = full dim, which is always
# a legal block shape).
# ----------------------------------------------------------------------------
def _pick_row_tile(dim, target=256):
    for t in (target, 512, 256, 128, 64, 32, 16, 8):
        if t <= dim and dim % t == 0:
            return t
    return dim


def _gelu(y):
    # TODO(synk): HF/Mosaic BERT 'gelu' is the exact erf form; the tanh
    # approximation is used to stay on guaranteed Mosaic lowerings (~1e-3 dev).
    return 0.5 * y * (1.0 + jnp.tanh(
        0.7978845608028654 * (y + 0.044715 * y * y * y)))


# ----------------------------------------------------------------------------
# Wqkv projection: weight-resident GEMM whose epilogue writes the result
# directly in head-major (3*num_heads, N, head_dim) layout (no XLA transpose).
# ----------------------------------------------------------------------------
def _qkv_head_split_kernel(x_ref, w_ref, b_ref, o_ref, *, num_heads, head_dim):
    x = x_ref[...]
    for t in range(3):                      # q, k, v: full-width MXU matmuls
        y = jnp.dot(x, w_ref[t], preferred_element_type=jnp.float32) + b_ref[t]
        for h in range(num_heads):          # head split stays in VMEM
            o_ref[t * num_heads + h] = (
                y[:, h * head_dim:(h + 1) * head_dim].astype(o_ref.dtype))


def qkv_project(x, w3, b3, num_heads):
    """x: (N, hidden); w3: (3, hidden, hidden); b3: (3, 1, hidden) (f32).

    Returns qkv in (3*num_heads, N, head_dim) layout."""
    n, hidden = x.shape
    head_dim = hidden // num_heads
    tm = _pick_row_tile(n, 256)
    grid = (n // tm,)
    return pl.pallas_call(
        functools.partial(_qkv_head_split_kernel,
                          num_heads=num_heads, head_dim=head_dim),
        out_shape=jax.ShapeDtypeStruct((3 * num_heads, n, head_dim), x.dtype),
        grid_spec=pltpu.PrefetchScalarGridSpec(
            num_scalar_prefetch=0,
            grid=grid,
            in_specs=[
                pl.BlockSpec((tm, hidden), lambda i: (i, 0)),
                pl.BlockSpec((3, hidden, hidden), lambda i: (0, 0, 0)),  # resident
                pl.BlockSpec((3, 1, hidden), lambda i: (0, 0, 0)),
            ],
            out_specs=pl.BlockSpec((3 * num_heads, tm, head_dim),
                                   lambda i: (0, i, 0)),
        ),
        compiler_params=pltpu.CompilerParams(
            dimension_semantics=("parallel",),
            vmem_limit_bytes=VMEM_LIMIT),
    )(x, w3, b3)


# ----------------------------------------------------------------------------
# Flash attention: grid (batch, head, q-tile, kv-tile); q/k/v sliced straight
# out of the head-major qkv buffer via the BlockSpecs; online softmax.
# ----------------------------------------------------------------------------
def _flash_kernel(q_ref, k_ref, v_ref, bias_ref, o_ref, m_sc, l_sc, acc_sc):
    ki = pl.program_id(3)

    @pl.when(ki == 0)
    def _():
        m_sc[...] = jnp.full(m_sc.shape, -jnp.inf, jnp.float32)
        l_sc[...] = jnp.zeros(l_sc.shape, jnp.float32)
        acc_sc[...] = jnp.zeros(acc_sc.shape, jnp.float32)

    # 1/sqrt(head_dim) already folded into the q slice of Wqkv.
    s = jax.lax.dot_general(q_ref[0], k_ref[0], (((1,), (1,)), ((), ())),
                            preferred_element_type=jnp.float32)
    s = s + bias_ref[0]                      # (1, tk) key-padding bias, broadcast

    m_prev = m_sc[...]
    m_new = jnp.maximum(m_prev, jnp.max(s, axis=-1, keepdims=True))
    alpha = jnp.exp(m_prev - m_new)
    p = jnp.exp(s - m_new)
    l_sc[...] = alpha * l_sc[...] + jnp.sum(p, axis=-1, keepdims=True)
    acc_sc[...] = alpha * acc_sc[...] + jnp.dot(
        p.astype(v_ref.dtype), v_ref[0], preferred_element_type=jnp.float32)
    m_sc[...] = m_new

    @pl.when(ki == pl.num_programs(3) - 1)
    def _():
        o_ref[0] = (acc_sc[...] *
                    pl.reciprocal(l_sc[...], approx=True)).astype(o_ref.dtype)


def flash_attention(qkv_heads, key_bias, num_heads, batch, seq):
    """qkv_heads: (3*num_heads, batch*seq, head_dim); key_bias: (batch, 1, seq).

    Returns ctx in (num_heads, batch*seq, head_dim) layout."""
    three_h, n, d = qkv_heads.shape
    tq = _pick_row_tile(seq, 512)
    tk = _pick_row_tile(seq, 512)
    qsteps, ksteps = seq // tq, seq // tk
    grid = (batch, num_heads, qsteps, ksteps)
    # TODO(synk): output last dim = head_dim (<128 lanes at real sizes) is not
    # lane-dense; packing 2 heads per output block would remove vst.msk stores.
    return pl.pallas_call(
        _flash_kernel,
        out_shape=jax.ShapeDtypeStruct((num_heads, n, d), qkv_heads.dtype),
        grid_spec=pltpu.PrefetchScalarGridSpec(
            num_scalar_prefetch=0,
            grid=grid,
            in_specs=[
                pl.BlockSpec((1, tq, d),
                             lambda b, h, qi, ki: (h, b * qsteps + qi, 0)),
                pl.BlockSpec((1, tk, d),
                             lambda b, h, qi, ki: (num_heads + h,
                                                   b * ksteps + ki, 0)),
                pl.BlockSpec((1, tk, d),
                             lambda b, h, qi, ki: (2 * num_heads + h,
                                                   b * ksteps + ki, 0)),
                pl.BlockSpec((1, 1, tk), lambda b, h, qi, ki: (b, 0, ki)),
            ],
            out_specs=pl.BlockSpec((1, tq, d),
                                   lambda b, h, qi, ki: (h, b * qsteps + qi, 0)),
            scratch_shapes=[
                pltpu.VMEM((tq, 1), jnp.float32),   # running max m
                pltpu.VMEM((tq, 1), jnp.float32),   # running denom l
                pltpu.VMEM((tq, d), jnp.float32),   # running numerator
            ],
        ),
        compiler_params=pltpu.CompilerParams(
            dimension_semantics=("parallel", "parallel", "parallel",
                                 "arbitrary"),
            vmem_limit_bytes=VMEM_LIMIT),
    )(qkv_heads, qkv_heads, qkv_heads, key_bias)


# ----------------------------------------------------------------------------
# BertSelfOutput: per-head context x head-split weight, fused residual + LN.
# Consumes ctx directly in (num_heads, N, head_dim) layout (no merge transpose).
# ----------------------------------------------------------------------------
def _attn_out_ln_kernel(ctx_ref, w_ref, b_ref, r_ref, g_ref, bb_ref, o_ref,
                        *, num_heads, eps):
    y = r_ref[...].astype(jnp.float32) + b_ref[...]
    for h in range(num_heads):               # head merge == K-reduction of GEMM
        y = y + jnp.dot(ctx_ref[h], w_ref[h],
                        preferred_element_type=jnp.float32)
    mean = jnp.mean(y, axis=-1, keepdims=True)
    var = jnp.mean(jnp.square(y - mean), axis=-1, keepdims=True)
    out = (y - mean) * jax.lax.rsqrt(var + eps) * g_ref[...] + bb_ref[...]
    o_ref[...] = out.astype(o_ref.dtype)


def attn_out_ln(ctx, w_h, b, residual, gamma, beta, eps=LN_EPS):
    num_heads, n, d = ctx.shape
    hidden = w_h.shape[-1]
    tm = _pick_row_tile(n, 256)
    grid = (n // tm,)
    return pl.pallas_call(
        functools.partial(_attn_out_ln_kernel, num_heads=num_heads, eps=eps),
        out_shape=jax.ShapeDtypeStruct((n, hidden), residual.dtype),
        grid_spec=pltpu.PrefetchScalarGridSpec(
            num_scalar_prefetch=0,
            grid=grid,
            in_specs=[
                pl.BlockSpec((num_heads, tm, d), lambda i: (0, i, 0)),
                pl.BlockSpec((num_heads, d, hidden), lambda i: (0, 0, 0)),
                pl.BlockSpec((1, hidden), lambda i: (0, 0)),
                pl.BlockSpec((tm, hidden), lambda i: (i, 0)),
                pl.BlockSpec((1, hidden), lambda i: (0, 0)),
                pl.BlockSpec((1, hidden), lambda i: (0, 0)),
            ],
            out_specs=pl.BlockSpec((tm, hidden), lambda i: (i, 0)),
        ),
        compiler_params=pltpu.CompilerParams(
            dimension_semantics=("parallel",),
            vmem_limit_bytes=VMEM_LIMIT),
    )(ctx, w_h, b.reshape(1, hidden).astype(jnp.float32), residual,
      gamma.reshape(1, hidden).astype(jnp.float32),
      beta.reshape(1, hidden).astype(jnp.float32))


# ----------------------------------------------------------------------------
# Weight-resident dense (+ optional GELU): grid over M only, no acc scratch.
# ----------------------------------------------------------------------------
def _dense_kernel(x_ref, w_ref, b_ref, o_ref, *, act):
    y = jnp.dot(x_ref[...], w_ref[...],
                preferred_element_type=jnp.float32) + b_ref[...]
    if act == "gelu":
        y = _gelu(y)
    o_ref[...] = y.astype(o_ref.dtype)


def dense(x, w, b, act=None):
    n, kdim = x.shape
    m = w.shape[1]
    tm = _pick_row_tile(n, 256)
    grid = (n // tm,)
    return pl.pallas_call(
        functools.partial(_dense_kernel, act=act),
        out_shape=jax.ShapeDtypeStruct((n, m), x.dtype),
        grid_spec=pltpu.PrefetchScalarGridSpec(
            num_scalar_prefetch=0,
            grid=grid,
            in_specs=[
                pl.BlockSpec((tm, kdim), lambda i: (i, 0)),
                pl.BlockSpec((kdim, m), lambda i: (0, 0)),    # weight resident
                pl.BlockSpec((1, m), lambda i: (0, 0)),
            ],
            out_specs=pl.BlockSpec((tm, m), lambda i: (i, 0)),
        ),
        compiler_params=pltpu.CompilerParams(
            dimension_semantics=("parallel",),
            vmem_limit_bytes=VMEM_LIMIT),
    )(x, w, b.reshape(1, m).astype(jnp.float32))


# ----------------------------------------------------------------------------
# Weight-resident dense with fused residual + LayerNorm + padding-mask epilogue
# ----------------------------------------------------------------------------
def _dense_ln_mask_kernel(x_ref, w_ref, b_ref, r_ref, g_ref, bb_ref, m_ref,
                          o_ref, *, eps):
    y = (jnp.dot(x_ref[...], w_ref[...], preferred_element_type=jnp.float32)
         + b_ref[...] + r_ref[...].astype(jnp.float32))
    mean = jnp.mean(y, axis=-1, keepdims=True)
    var = jnp.mean(jnp.square(y - mean), axis=-1, keepdims=True)
    out = (y - mean) * jax.lax.rsqrt(var + eps) * g_ref[...] + bb_ref[...]
    out = out * m_ref[...]                    # fused pad_input zeroing
    o_ref[...] = out.astype(o_ref.dtype)


def dense_ln_residual_mask(x, w, b, residual, gamma, beta, row_mask,
                           eps=LN_EPS):
    n, kdim = x.shape
    h = w.shape[1]
    tm = _pick_row_tile(n, 256)
    grid = (n // tm,)
    return pl.pallas_call(
        functools.partial(_dense_ln_mask_kernel, eps=eps),
        out_shape=jax.ShapeDtypeStruct((n, h), x.dtype),
        grid_spec=pltpu.PrefetchScalarGridSpec(
            num_scalar_prefetch=0,
            grid=grid,
            in_specs=[
                pl.BlockSpec((tm, kdim), lambda i: (i, 0)),
                pl.BlockSpec((kdim, h), lambda i: (0, 0)),    # weight resident
                pl.BlockSpec((1, h), lambda i: (0, 0)),
                pl.BlockSpec((tm, h), lambda i: (i, 0)),
                pl.BlockSpec((1, h), lambda i: (0, 0)),
                pl.BlockSpec((1, h), lambda i: (0, 0)),
                pl.BlockSpec((tm, 1), lambda i: (i, 0)),
            ],
            out_specs=pl.BlockSpec((tm, h), lambda i: (i, 0)),
        ),
        compiler_params=pltpu.CompilerParams(
            dimension_semantics=("parallel",),
            vmem_limit_bytes=VMEM_LIMIT),
    )(x, w, b.reshape(1, h).astype(jnp.float32), residual,
      gamma.reshape(1, h).astype(jnp.float32),
      beta.reshape(1, h).astype(jnp.float32), row_mask)


# ----------------------------------------------------------------------------
# BertLayer / BertEncoder (glue in plain JAX, hot paths in Pallas)
# ----------------------------------------------------------------------------
def bert_layer(h2d, key_bias, mask_col, params, num_heads, batch, seq):
    # BertFlashSelfAttention: Wqkv projection -> head-major (3H, N, D) layout
    qkv_heads = qkv_project(h2d, params["wqkv_w3"], params["wqkv_b3"],
                            num_heads)
    # flash attention: (num_heads, N, D) context, heads indexed via BlockSpecs
    ctx = flash_attention(qkv_heads, key_bias, num_heads, batch, seq)

    # BertSelfOutput: per-head dense + (dropout=0) + LayerNorm(residual) fused
    h1 = attn_out_ln(ctx, params["attn_out_w_h"], params["attn_out_b"],
                     h2d, params["ln1_g"], params["ln1_b"])

    # BertIntermediate: dense + GELU (weight resident)
    inter = dense(h1, params["inter_w"], params["inter_b"], act="gelu")

    # BertOutput: dense + (dropout=0) + LayerNorm(residual) + pad-mask fused
    h2 = dense_ln_residual_mask(inter, params["out_w"], params["out_b"],
                                h1, params["ln2_g"], params["ln2_b"], mask_col)
    return h2


def bert_encoder(hidden_states, attention_mask, params, num_heads, num_layers,
                 output_all_encoded_layers=True):
    """Mirrors BertEncoder.forward (unpad_flash_attn path, subset_mask=None)."""
    batch, seq, hidden = hidden_states.shape
    head_dim = hidden // num_heads
    mask_f = attention_mask.astype(jnp.float32)                  # (B, S)
    # key-padding bias applied in f32 score space inside the flash kernel
    key_bias = ((1.0 - mask_f) * jnp.float32(-1e9))[:, None, :]  # (B, 1, S)
    mask_col = mask_f.reshape(batch * seq, 1)                    # fused pad mask

    # --- one-time weight prep (tiny vs. activation traffic) -----------------
    scale = 1.0 / math.sqrt(head_dim)
    qsc = jnp.array([scale, 1.0, 1.0], jnp.float32).reshape(3, 1, 1)
    # Wqkv columns are ordered (t, h, d); split t out and fold the q scale in.
    w3 = params["wqkv_w"].reshape(hidden, 3, hidden).transpose(1, 0, 2) * qsc
    b3 = params["wqkv_b"].reshape(3, 1, hidden) * qsc
    p16 = {
        "wqkv_w3": w3.astype(jnp.bfloat16),                 # (3, H, H)
        "wqkv_b3": b3.astype(jnp.float32),                  # (3, 1, H)
        "attn_out_w_h": params["attn_out_w"].reshape(
            num_heads, head_dim, hidden).astype(jnp.bfloat16),
        "attn_out_b": params["attn_out_b"],
        "ln1_g": params["ln1_g"], "ln1_b": params["ln1_b"],
        "inter_w": params["inter_w"].astype(jnp.bfloat16),
        "inter_b": params["inter_b"],
        "out_w": params["out_w"].astype(jnp.bfloat16),
        "out_b": params["out_b"],
        "ln2_g": params["ln2_g"], "ln2_b": params["ln2_b"],
    }

    # bf16 activations with f32 MXU accumulation (replaces fp16 round-trip)
    h2d = hidden_states.astype(jnp.bfloat16).reshape(batch * seq, hidden)

    all_encoder_layers = []
    for _ in range(num_layers):
        # copy.deepcopy in the reference => all layers share identical weights
        h2d = bert_layer(h2d, key_bias, mask_col, p16, num_heads, batch, seq)
        if output_all_encoded_layers:
            # TODO(synk): reference returns the unpadded (nnz, H) gather; we
            # return the padded+zeroed equivalent so the encoder stays jittable.
            all_encoder_layers.append(
                h2d.reshape(batch, seq, hidden).astype(hidden_states.dtype))

    # pad_input: padding rows already zeroed by the fused epilogue mask
    padded = h2d.reshape(batch, seq, hidden).astype(hidden_states.dtype)
    if not output_all_encoded_layers:
        all_encoder_layers.append(padded)
    return all_encoder_layers


# ----------------------------------------------------------------------------
# Deterministic parameter init (single BertLayer, deepcopied -> shared weights)
# ----------------------------------------------------------------------------
def init_params(key, hidden, intermediate):
    ks = jax.random.split(key, 8)
    s = 0.02
    return {
        "wqkv_w": s * jax.random.normal(ks[0], (hidden, 3 * hidden), jnp.float32),
        "wqkv_b": s * jax.random.normal(ks[1], (3 * hidden,), jnp.float32),
        "attn_out_w": s * jax.random.normal(ks[2], (hidden, hidden), jnp.float32),
        "attn_out_b": s * jax.random.normal(ks[3], (hidden,), jnp.float32),
        "ln1_g": jnp.ones((hidden,), jnp.float32),
        "ln1_b": jnp.zeros((hidden,), jnp.float32),
        "inter_w": s * jax.random.normal(ks[4], (hidden, intermediate), jnp.float32),
        "inter_b": s * jax.random.normal(ks[5], (intermediate,), jnp.float32),
        "out_w": s * jax.random.normal(ks[6], (intermediate, hidden), jnp.float32),
        "out_b": s * jax.random.normal(ks[7], (hidden,), jnp.float32),
        "ln2_g": jnp.ones((hidden,), jnp.float32),
        "ln2_b": jnp.zeros((hidden,), jnp.float32),
    }


if __name__ == "__main__":
    batch, seq, hidden, heads, inter, layers = 2, 8, 32, 4, 64, 2

    key = jax.random.PRNGKey(0)
    k_x, k_p = jax.random.split(key)
    hidden_states = jax.random.normal(k_x, (batch, seq, hidden), jnp.float32)
    # variable-length sequences: first full (8), second has 6 valid tokens
    attention_mask = jnp.array([[1] * 8, [1] * 6 + [0] * 2], dtype=jnp.int32)

    params = init_params(k_p, hidden, inter)

    encoder_fn = jax.jit(functools.partial(
        bert_encoder, num_heads=heads, num_layers=layers,
        output_all_encoded_layers=False))

    outs = encoder_fn(hidden_states, attention_mask, params)
    final = outs[-1]                 # (batch, seq, hidden), zeros at padding
    jax.block_until_ready(final)
    assert final.shape == (batch, seq, hidden)
    assert bool(jnp.all(final[1, 6:] == 0.0))   # pad_input zeroing reproduced
    print("KERNEL_OK")
</pallas_src>

<mosaic_0001>
module attributes {stable_mosaic.version = 11 : i64} {
  func.func @_flash_kernel(%arg0: i32, %arg1: i32, %arg2: i32, %arg3: i32, %arg4: memref<1x8x8xbf16, #tpu.memory_space<vmem>>, %arg5: memref<1x8x8xbf16, #tpu.memory_space<vmem>>, %arg6: memref<1x8x8xbf16, #tpu.memory_space<vmem>>, %arg7: memref<1x1x8xf32, #tpu.memory_space<vmem>>, %arg8: memref<1x8x8xbf16, #tpu.memory_space<vmem>>, %arg9: memref<8x1xf32, #tpu.memory_space<vmem>>, %arg10: memref<8x1xf32, #tpu.memory_space<vmem>>, %arg11: memref<8x8xf32, #tpu.memory_space<vmem>>) attributes {dimension_semantics = [#tpu.dimension_semantics<parallel>, #tpu.dimension_semantics<parallel>, #tpu.dimension_semantics<parallel>, #tpu.dimension_semantics<arbitrary>], iteration_bounds = array<i64: 2, 4, 1, 1>, scalar_prefetch = 0 : i64, scratch_operands = 3 : i64, tpu.core_type = #tpu.core_type<tc>, window_params = [{transform_indices = @transform_0, window_bounds = array<i64: 1, 8, 8>}, {transform_indices = @transform_1, window_bounds = array<i64: 1, 8, 8>}, {transform_indices = @transform_2, window_bounds = array<i64: 1, 8, 8>}, {transform_indices = @transform_3, window_bounds = array<i64: 1, 1, 8>}, {transform_indices = @transform_4, window_bounds = array<i64: 1, 8, 8>}]} {
    %c0_i32 = arith.constant 0 : i32
    %0 = arith.cmpi eq, %arg3, %c0_i32 : i32
    %1 = arith.extui %0 : i1 to i32
    %c0_i32_0 = arith.constant 0 : i32
    %2 = arith.cmpi ne, %1, %c0_i32_0 : i32
    scf.if %2 {
      %cst_29 = arith.constant 0xFF800000 : f32
      %40 = vector.broadcast %cst_29 : f32 to vector<8x1xf32>
      %c0_30 = arith.constant 0 : index
      %c0_31 = arith.constant 0 : index
      %41 = vector.load %arg9[%c0_30, %c0_31] : memref<8x1xf32, #tpu.memory_space<vmem>>, vector<8x1xf32>
      tpu.vector_store %arg9[%c0_30, %c0_31], %40 {strides = array<i32>} : memref<8x1xf32, #tpu.memory_space<vmem>>, vector<8x1xf32>,
      %cst_32 = arith.constant 0.000000e+00 : f32
      %42 = vector.broadcast %cst_32 : f32 to vector<8x1xf32>
      %c0_33 = arith.constant 0 : index
      %c0_34 = arith.constant 0 : index
      %43 = vector.load %arg10[%c0_33, %c0_34] : memref<8x1xf32, #tpu.memory_space<vmem>>, vector<8x1xf32>
      tpu.vector_store %arg10[%c0_33, %c0_34], %42 {strides = array<i32>} : memref<8x1xf32, #tpu.memory_space<vmem>>, vector<8x1xf32>,
      %cst_35 = arith.constant 0.000000e+00 : f32
      %44 = vector.broadcast %cst_35 : f32 to vector<8x8xf32>
      %c0_36 = arith.constant 0 : index
      %c0_37 = arith.constant 0 : index
      %45 = vector.load %arg11[%c0_36, %c0_37] : memref<8x8xf32, #tpu.memory_space<vmem>>, vector<8x8xf32>
      tpu.vector_store %arg11[%c0_36, %c0_37], %44 {strides = array<i32>} : memref<8x8xf32, #tpu.memory_space<vmem>>, vector<8x8xf32>,
    } else {
    }
    %c0 = arith.constant 0 : index
    %c0_1 = arith.constant 0 : index
    %c0_2 = arith.constant 0 : index
    %3 = vector.load %arg4[%c0, %c0_1, %c0_2] : memref<1x8x8xbf16, #tpu.memory_space<vmem>>, vector<1x8x8xbf16>
    %4 = vector.shape_cast %3 : vector<1x8x8xbf16> to vector<8x8xbf16>
    %c0_3 = arith.constant 0 : index
    %c0_4 = arith.constant 0 : index
    %c0_5 = arith.constant 0 : index
    %5 = vector.load %arg5[%c0_3, %c0_4, %c0_5] : memref<1x8x8xbf16, #tpu.memory_space<vmem>>, vector<1x8x8xbf16>
    %6 = vector.shape_cast %5 : vector<1x8x8xbf16> to vector<8x8xbf16>
    %cst = arith.constant dense<0.000000e+00> : vector<8x8xf32>
    %7 = tpu.matmul %4, %6, %cst {dimension_numbers = #tpu.dot_dimension_numbers<[1], [1], [0], [0], [0, 0, 1, 0], [], []>} : vector<8x8xbf16>, vector<8x8xbf16>, vector<8x8xf32> -> vector<8x8xf32>
    %c0_6 = arith.constant 0 : index
    %c0_7 = arith.constant 0 : index
    %c0_8 = arith.constant 0 : index
    %8 = vector.load %arg7[%c0_6, %c0_7, %c0_8] : memref<1x1x8xf32, #tpu.memory_space<vmem>>, vector<1x1x8xf32>
    %9 = vector.shape_cast %8 : vector<1x1x8xf32> to vector<1x8xf32>
    %10 = vector.broadcast %9 : vector<1x8xf32> to vector<8x8xf32>
    %11 = arith.addf %7, %10 : vector<8x8xf32>
    %c0_9 = arith.constant 0 : index
    %c0_10 = arith.constant 0 : index
    %12 = vector.load %arg9[%c0_9, %c0_10] : memref<8x1xf32, #tpu.memory_space<vmem>>, vector<8x1xf32>
    %cst_11 = arith.constant dense<0xFF800000> : vector<8xf32>
    %13 = vector.multi_reduction <maximumf>, %11, %cst_11 [1] : vector<8x8xf32> to vector<8xf32>
    %14 = vector.shape_cast %13 : vector<8xf32> to vector<8x1xf32>
    %15 = arith.maximumf %12, %14 : vector<8x1xf32>
    %16 = arith.subf %12, %15 : vector<8x1xf32>
    %17 = math.exp %16 : vector<8x1xf32>
    %18 = vector.broadcast %15 : vector<8x1xf32> to vector<8x8xf32>
    %19 = arith.subf %11, %18 : vector<8x8xf32>
    %20 = math.exp %19 : vector<8x8xf32>
    %c0_12 = arith.constant 0 : index
    %c0_13 = arith.constant 0 : index
    %21 = vector.load %arg10[%c0_12, %c0_13] : memref<8x1xf32, #tpu.memory_space<vmem>>, vector<8x1xf32>
    %22 = arith.mulf %17, %21 : vector<8x1xf32>
    %cst_14 = arith.constant dense<0.000000e+00> : vector<8xf32>
    %23 = vector.multi_reduction <add>, %20, %cst_14 [1] : vector<8x8xf32> to vector<8xf32>
    %24 = vector.shape_cast %23 : vector<8xf32> to vector<8x1xf32>
    %25 = arith.addf %22, %24 : vector<8x1xf32>
    %c0_15 = arith.constant 0 : index
    %c0_16 = arith.constant 0 : index
    %26 = vector.load %arg10[%c0_15, %c0_16] : memref<8x1xf32, #tpu.memory_space<vmem>>, vector<8x1xf32>
    tpu.vector_store %arg10[%c0_15, %c0_16], %25 {strides = array<i32>} : memref<8x1xf32, #tpu.memory_space<vmem>>, vector<8x1xf32>,
    %c0_17 = arith.constant 0 : index
    %c0_18 = arith.constant 0 : index
    %27 = vector.load %arg11[%c0_17, %c0_18] : memref<8x8xf32, #tpu.memory_space<vmem>>, vector<8x8xf32>
    %28 = vector.broadcast %17 : vector<8x1xf32> to vector<8x8xf32>
    %29 = arith.mulf %28, %27 : vector<8x8xf32>
    %30 = arith.truncf %20 : vector<8x8xf32> to vector<8x8xbf16>
    %c0_19 = arith.constant 0 : index
    %c0_20 = arith.constant 0 : index
    %c0_21 = arith.constant 0 : index
    %31 = vector.load %arg6[%c0_19, %c0_20, %c0_21] : memref<1x8x8xbf16, #tpu.memory_space<vmem>>, vector<1x8x8xbf16>
    %32 = vector.shape_cast %31 : vector<1x8x8xbf16> to vector<8x8xbf16>
    %cst_22 = arith.constant dense<0.000000e+00> : vector<8x8xf32>
    %33 = tpu.matmul %30, %32, %cst_22 {dimension_numbers = #tpu.dot_dimension_numbers<[1], [0], [0], [1], [0, 0, 1, 1], [], []>} : vector<8x8xbf16>, vector<8x8xbf16>, vector<8x8xf32> -> vector<8x8xf32>
    %34 = arith.addf %29, %33 : vector<8x8xf32>
    %c0_23 = arith.constant 0 : index
    %c0_24 = arith.constant 0 : index
    %35 = vector.load %arg11[%c0_23, %c0_24] : memref<8x8xf32, #tpu.memory_space<vmem>>, vector<8x8xf32>
    tpu.vector_store %arg11[%c0_23, %c0_24], %34 {strides = array<i32>} : memref<8x8xf32, #tpu.memory_space<vmem>>, vector<8x8xf32>,
    %c0_25 = arith.constant 0 : index
    %c0_26 = arith.constant 0 : index
    %36 = vector.load %arg9[%c0_25, %c0_26] : memref<8x1xf32, #tpu.memory_space<vmem>>, vector<8x1xf32>
    tpu.vector_store %arg9[%c0_25, %c0_26], %15 {strides = array<i32>} : memref<8x1xf32, #tpu.memory_space<vmem>>, vector<8x1xf32>,
    %c0_i32_27 = arith.constant 0 : i32
    %37 = arith.cmpi eq, %arg3, %c0_i32_27 : i32
    %38 = arith.extui %37 : i1 to i32
    %c0_i32_28 = arith.constant 0 : i32
    %39 = arith.cmpi ne, %38, %c0_i32_28 : i32
    scf.if %39 {
      %c0_29 = arith.constant 0 : index
      %c0_30 = arith.constant 0 : index
      %40 = vector.load %arg11[%c0_29, %c0_30] : memref<8x8xf32, #tpu.memory_space<vmem>>, vector<8x8xf32>
      %c0_31 = arith.constant 0 : index
      %c0_32 = arith.constant 0 : index
      %41 = vector.load %arg10[%c0_31, %c0_32] : memref<8x1xf32, #tpu.memory_space<vmem>>, vector<8x1xf32>
      %42 = tpu.reciprocal %41 {approx = true} : vector<8x1xf32> -> vector<8x1xf32>
      %43 = vector.broadcast %42 : vector<8x1xf32> to vector<8x8xf32>
      %44 = arith.mulf %40, %43 : vector<8x8xf32>
      %45 = arith.truncf %44 : vector<8x8xf32> to vector<8x8xbf16>
      %c0_33 = arith.constant 0 : index
      %c0_34 = arith.constant 0 : index
      %c0_35 = arith.constant 0 : index
      %46 = vector.load %arg8[%c0_33, %c0_34, %c0_35] : memref<1x8x8xbf16, #tpu.memory_space<vmem>>, vector<1x8x8xbf16>
      %47 = vector.shape_cast %46 : vector<1x8x8xbf16> to vector<8x8xbf16>
      %48 = vector.shape_cast %45 : vector<8x8xbf16> to vector<1x8x8xbf16>
      tpu.vector_store %arg8[%c0_33, %c0_34, %c0_35], %48 {strides = array<i32>} : memref<1x8x8xbf16, #tpu.memory_space<vmem>>, vector<1x8x8xbf16>,
    } else {
    }
    return
  }
  func.func @transform_0(%arg0: i32, %arg1: i32, %arg2: i32, %arg3: i32) -> (i32, i32, i32) {
    %c1_i32 = arith.constant 1 : i32
    %0 = arith.muli %arg0, %c1_i32 : i32
    %1 = arith.addi %0, %arg2 : i32
    %c0_i32 = arith.constant 0 : i32
    %c0_i32_0 = arith.constant 0 : i32
    return %arg1, %1, %c0_i32 : i32, i32, i32
  }
  func.func @transform_1(%arg0: i32, %arg1: i32, %arg2: i32, %arg3: i32) -> (i32, i32, i32) {
    %c4_i32 = arith.constant 4 : i32
    %0 = arith.addi %c4_i32, %arg1 : i32
    %c1_i32 = arith.constant 1 : i32
    %1 = arith.muli %arg0, %c1_i32 : i32
    %2 = arith.addi %1, %arg3 : i32
    %c0_i32 = arith.constant 0 : i32
    %c0_i32_0 = arith.constant 0 : i32
    return %0, %2, %c0_i32 : i32, i32, i32
  }
  func.func @transform_2(%arg0: i32, %arg1: i32, %arg2: i32, %arg3: i32) -> (i32, i32, i32) {
    %c8_i32 = arith.constant 8 : i32
    %0 = arith.addi %c8_i32, %arg1 : i32
    %c1_i32 = arith.constant 1 : i32
    %1 = arith.muli %arg0, %c1_i32 : i32
    %2 = arith.addi %1, %arg3 : i32
    %c0_i32 = arith.constant 0 : i32
    %c0_i32_0 = arith.constant 0 : i32
    return %0, %2, %c0_i32 : i32, i32, i32
  }
  func.func @transform_3(%arg0: i32, %arg1: i32, %arg2: i32, %arg3: i32) -> (i32, i32, i32) {
    %c0_i32 = arith.constant 0 : i32
    %c0_i32_0 = arith.constant 0 : i32
    return %arg0, %c0_i32, %arg3 : i32, i32, i32
  }
  func.func @transform_4(%arg0: i32, %arg1: i32, %arg2: i32, %arg3: i32) -> (i32, i32, i32) {
    %c1_i32 = arith.constant 1 : i32
    %0 = arith.muli %arg0, %c1_i32 : i32
    %1 = arith.addi %0, %arg2 : i32
    %c0_i32 = arith.constant 0 : i32
    %c0_i32_0 = arith.constant 0 : i32
    return %arg1, %1, %c0_i32 : i32, i32, i32
  }
}

module attributes {stable_mosaic.version = 11 : i64} {
  func.func @_qkv_head_split_kernel(%arg0: i32, %arg1: memref<16x32xbf16, #tpu.memory_space<vmem>>, %arg2: memref<3x32x32xbf16, #tpu.memory_space<vmem>>, %arg3: memref<3x1x32xf32, #tpu.memory_space<vmem>>, %arg4: memref<12x16x8xbf16, #tpu.memory_space<vmem>>) attributes {dimension_semantics = [#tpu.dimension_semantics<parallel>], iteration_bounds = array<i64: 1>, scalar_prefetch = 0 : i64, scratch_operands = 0 : i64, tpu.core_type = #tpu.core_type<tc>, window_params = [{transform_indices = @transform_0, window_bounds = array<i64: 16, 32>}, {pipeline_mode = #tpu.pipeline_mode<synchronous>, transform_indices = @transform_1, window_bounds = array<i64: 3, 32, 32>}, {pipeline_mode = #tpu.pipeline_mode<synchronous>, transform_indices = @transform_2, window_bounds = array<i64: 3, 1, 32>}, {transform_indices = @transform_3, window_bounds = array<i64: 12, 16, 8>}]} {
    %c0 = arith.constant 0 : index
    %c0_0 = arith.constant 0 : index
    %0 = vector.load %arg1[%c0, %c0_0] : memref<16x32xbf16, #tpu.memory_space<vmem>>, vector<16x32xbf16>
    %c0_1 = arith.constant 0 : index
    %c0_2 = arith.constant 0 : index
    %c0_3 = arith.constant 0 : index
    %1 = vector.load %arg2[%c0_1, %c0_2, %c0_3] : memref<3x32x32xbf16, #tpu.memory_space<vmem>>, vector<1x32x32xbf16>
    %2 = vector.shape_cast %1 : vector<1x32x32xbf16> to vector<32x32xbf16>
    %cst = arith.constant dense<0.000000e+00> : vector<16x32xf32>
    %3 = tpu.matmul %0, %2, %cst {dimension_numbers = #tpu.dot_dimension_numbers<[1], [0], [0], [1], [0, 0, 1, 1], [], []>} : vector<16x32xbf16>, vector<32x32xbf16>, vector<16x32xf32> -> vector<16x32xf32>
    %c0_4 = arith.constant 0 : index
    %c0_5 = arith.constant 0 : index
    %c0_6 = arith.constant 0 : index
    %4 = vector.load %arg3[%c0_4, %c0_5, %c0_6] : memref<3x1x32xf32, #tpu.memory_space<vmem>>, vector<1x1x32xf32>
    %5 = vector.shape_cast %4 : vector<1x1x32xf32> to vector<1x32xf32>
    %6 = vector.broadcast %5 : vector<1x32xf32> to vector<16x32xf32>
    %7 = arith.addf %3, %6 : vector<16x32xf32>
    %8 = vector.extract_strided_slice %7 {offsets = [0, 0], sizes = [16, 8], strides = [1, 1]} : vector<16x32xf32> to vector<16x8xf32>
    %9 = arith.truncf %8 : vector<16x8xf32> to vector<16x8xbf16>
    %c0_7 = arith.constant 0 : index
    %c0_8 = arith.constant 0 : index
    %c0_9 = arith.constant 0 : index
    %10 = vector.load %arg4[%c0_7, %c0_8, %c0_9] : memref<12x16x8xbf16, #tpu.memory_space<vmem>>, vector<1x16x8xbf16>
    %11 = vector.shape_cast %10 : vector<1x16x8xbf16> to vector<16x8xbf16>
    %12 = vector.shape_cast %9 : vector<16x8xbf16> to vector<1x16x8xbf16>
    tpu.vector_store %arg4[%c0_7, %c0_8, %c0_9], %12 {strides = array<i32>} : memref<12x16x8xbf16, #tpu.memory_space<vmem>>, vector<1x16x8xbf16>,
    %13 = vector.extract_strided_slice %7 {offsets = [0, 8], sizes = [16, 8], strides = [1, 1]} : vector<16x32xf32> to vector<16x8xf32>
    %14 = arith.truncf %13 : vector<16x8xf32> to vector<16x8xbf16>
    %c1 = arith.constant 1 : index
    %c0_10 = arith.constant 0 : index
    %c0_11 = arith.constant 0 : index
    %15 = vector.load %arg4[%c1, %c0_10, %c0_11] : memref<12x16x8xbf16, #tpu.memory_space<vmem>>, vector<1x16x8xbf16>
    %16 = vector.shape_cast %15 : vector<1x16x8xbf16> to vector<16x8xbf16>
    %17 = vector.shape_cast %14 : vector<16x8xbf16> to vector<1x16x8xbf16>
    tpu.vector_store %arg4[%c1, %c0_10, %c0_11], %17 {strides = array<i32>} : memref<12x16x8xbf16, #tpu.memory_space<vmem>>, vector<1x16x8xbf16>,
    %18 = vector.extract_strided_slice %7 {offsets = [0, 16], sizes = [16, 8], strides = [1, 1]} : vector<16x32xf32> to vector<16x8xf32>
    %19 = arith.truncf %18 : vector<16x8xf32> to vector<16x8xbf16>
    %c2 = arith.constant 2 : index
    %c0_12 = arith.constant 0 : index
    %c0_13 = arith.constant 0 : index
    %20 = vector.load %arg4[%c2, %c0_12, %c0_13] : memref<12x16x8xbf16, #tpu.memory_space<vmem>>, vector<1x16x8xbf16>
    %21 = vector.shape_cast %20 : vector<1x16x8xbf16> to vector<16x8xbf16>
    %22 = vector.shape_cast %19 : vector<16x8xbf16> to vector<1x16x8xbf16>
    tpu.vector_store %arg4[%c2, %c0_12, %c0_13], %22 {strides = array<i32>} : memref<12x16x8xbf16, #tpu.memory_space<vmem>>, vector<1x16x8xbf16>,
    %23 = vector.extract_strided_slice %7 {offsets = [0, 24], sizes = [16, 8], strides = [1, 1]} : vector<16x32xf32> to vector<16x8xf32>
    %24 = arith.truncf %23 : vector<16x8xf32> to vector<16x8xbf16>
    %c3 = arith.constant 3 : index
    %c0_14 = arith.constant 0 : index
    %c0_15 = arith.constant 0 : index
    %25 = vector.load %arg4[%c3, %c0_14, %c0_15] : memref<12x16x8xbf16, #tpu.memory_space<vmem>>, vector<1x16x8xbf16>
    %26 = vector.shape_cast %25 : vector<1x16x8xbf16> to vector<16x8xbf16>
    %27 = vector.shape_cast %24 : vector<16x8xbf16> to vector<1x16x8xbf16>
    tpu.vector_store %arg4[%c3, %c0_14, %c0_15], %27 {strides = array<i32>} : memref<12x16x8xbf16, #tpu.memory_space<vmem>>, vector<1x16x8xbf16>,
    %c1_16 = arith.constant 1 : index
    %c0_17 = arith.constant 0 : index
    %c0_18 = arith.constant 0 : index
    %28 = vector.load %arg2[%c1_16, %c0_17, %c0_18] : memref<3x32x32xbf16, #tpu.memory_space<vmem>>, vector<1x32x32xbf16>
    %29 = vector.shape_cast %28 : vector<1x32x32xbf16> to vector<32x32xbf16>
    %cst_19 = arith.constant dense<0.000000e+00> : vector<16x32xf32>
    %30 = tpu.matmul %0, %29, %cst_19 {dimension_numbers = #tpu.dot_dimension_numbers<[1], [0], [0], [1], [0, 0, 1, 1], [], []>} : vector<16x32xbf16>, vector<32x32xbf16>, vector<16x32xf32> -> vector<16x32xf32>
    %c1_20 = arith.constant 1 : index
    %c0_21 = arith.constant 0 : index
    %c0_22 = arith.constant 0 : index
    %31 = vector.load %arg3[%c1_20, %c0_21, %c0_22] : memref<3x1x32xf32, #tpu.memory_space<vmem>>, vector<1x1x32xf32>
    %32 = vector.shape_cast %31 : vector<1x1x32xf32> to vector<1x32xf32>
    %33 = vector.broadcast %32 : vector<1x32xf32> to vector<16x32xf32>
    %34 = arith.addf %30, %33 : vector<16x32xf32>
    %35 = vector.extract_strided_slice %34 {offsets = [0, 0], sizes = [16, 8], strides = [1, 1]} : vector<16x32xf32> to vector<16x8xf32>
    %36 = arith.truncf %35 : vector<16x8xf32> to vector<16x8xbf16>
    %c4 = arith.constant 4 : index
    %c0_23 = arith.constant 0 : index
    %c0_24 = arith.constant 0 : index
    %37 = vector.load %arg4[%c4, %c0_23, %c0_24] : memref<12x16x8xbf16, #tpu.memory_space<vmem>>, vector<1x16x8xbf16>
    %38 = vector.shape_cast %37 : vector<1x16x8xbf16> to vector<16x8xbf16>
    %39 = vector.shape_cast %36 : vector<16x8xbf16> to vector<1x16x8xbf16>
    tpu.vector_store %arg4[%c4, %c0_23, %c0_24], %39 {strides = array<i32>} : memref<12x16x8xbf16, #tpu.memory_space<vmem>>, vector<1x16x8xbf16>,
    %40 = vector.extract_strided_slice %34 {offsets = [0, 8], sizes = [16, 8], strides = [1, 1]} : vector<16x32xf32> to vector<16x8xf32>
    %41 = arith.truncf %40 : vector<16x8xf32> to vector<16x8xbf16>
    %c5 = arith.constant 5 : index
    %c0_25 = arith.constant 0 : index
    %c0_26 = arith.constant 0 : index
    %42 = vector.load %arg4[%c5, %c0_25, %c0_26] : memref<12x16x8xbf16, #tpu.memory_space<vmem>>, vector<1x16x8xbf16>
    %43 = vector.shape_cast %42 : vector<1x16x8xbf16> to vector<16x8xbf16>
    %44 = vector.shape_cast %41 : vector<16x8xbf16> to vector<1x16x8xbf16>
    tpu.vector_store %arg4[%c5, %c0_25, %c0_26], %44 {strides = array<i32>} : memref<12x16x8xbf16, #tpu.memory_space<vmem>>, vector<1x16x8xbf16>,
    %45 = vector.extract_strided_slice %34 {offsets = [0, 16], sizes = [16, 8], strides = [1, 1]} : vector<16x32xf32> to vector<16x8xf32>
    %46 = arith.truncf %45 : vector<16x8xf32> to vector<16x8xbf16>
    %c6 = arith.constant 6 : index
    %c0_27 = arith.constant 0 : index
    %c0_28 = arith.constant 0 : index
    %47 = vector.load %arg4[%c6, %c0_27, %c0_28] : memref<12x16x8xbf16, #tpu.memory_space<vmem>>, vector<1x16x8xbf16>
    %48 = vector.shape_cast %47 : vector<1x16x8xbf16> to vector<16x8xbf16>
    %49 = vector.shape_cast %46 : vector<16x8xbf16> to vector<1x16x8xbf16>
    tpu.vector_store %arg4[%c6, %c0_27, %c0_28], %49 {strides = array<i32>} : memref<12x16x8xbf16, #tpu.memory_space<vmem>>, vector<1x16x8xbf16>,
    %50 = vector.extract_strided_slice %34 {offsets = [0, 24], sizes = [16, 8], strides = [1, 1]} : vector<16x32xf32> to vector<16x8xf32>
    %51 = arith.truncf %50 : vector<16x8xf32> to vector<16x8xbf16>
    %c7 = arith.constant 7 : index
    %c0_29 = arith.constant 0 : index
    %c0_30 = arith.constant 0 : index
    %52 = vector.load %arg4[%c7, %c0_29, %c0_30] : memref<12x16x8xbf16, #tpu.memory_space<vmem>>, vector<1x16x8xbf16>
    %53 = vector.shape_cast %52 : vector<1x16x8xbf16> to vector<16x8xbf16>
    %54 = vector.shape_cast %51 : vector<16x8xbf16> to vector<1x16x8xbf16>
    tpu.vector_store %arg4[%c7, %c0_29, %c0_30], %54 {strides = array<i32>} : memref<12x16x8xbf16, #tpu.memory_space<vmem>>, vector<1x16x8xbf16>,
    %c2_31 = arith.constant 2 : index
    %c0_32 = arith.constant 0 : index
    %c0_33 = arith.constant 0 : index
    %55 = vector.load %arg2[%c2_31, %c0_32, %c0_33] : memref<3x32x32xbf16, #tpu.memory_space<vmem>>, vector<1x32x32xbf16>
    %56 = vector.shape_cast %55 : vector<1x32x32xbf16> to vector<32x32xbf16>
    %cst_34 = arith.constant dense<0.000000e+00> : vector<16x32xf32>
    %57 = tpu.matmul %0, %56, %cst_34 {dimension_numbers = #tpu.dot_dimension_numbers<[1], [0], [0], [1], [0, 0, 1, 1], [], []>} : vector<16x32xbf16>, vector<32x32xbf16>, vector<16x32xf32> -> vector<16x32xf32>
    %c2_35 = arith.constant 2 : index
    %c0_36 = arith.constant 0 : index
    %c0_37 = arith.constant 0 : index
    %58 = vector.load %arg3[%c2_35, %c0_36, %c0_37] : memref<3x1x32xf32, #tpu.memory_space<vmem>>, vector<1x1x32xf32>
    %59 = vector.shape_cast %58 : vector<1x1x32xf32> to vector<1x32xf32>
    %60 = vector.broadcast %59 : vector<1x32xf32> to vector<16x32xf32>
    %61 = arith.addf %57, %60 : vector<16x32xf32>
    %62 = vector.extract_strided_slice %61 {offsets = [0, 0], sizes = [16, 8], strides = [1, 1]} : vector<16x32xf32> to vector<16x8xf32>
    %63 = arith.truncf %62 : vector<16x8xf32> to vector<16x8xbf16>
    %c8 = arith.constant 8 : index
    %c0_38 = arith.constant 0 : index
    %c0_39 = arith.constant 0 : index
    %64 = vector.load %arg4[%c8, %c0_38, %c0_39] : memref<12x16x8xbf16, #tpu.memory_space<vmem>>, vector<1x16x8xbf16>
    %65 = vector.shape_cast %64 : vector<1x16x8xbf16> to vector<16x8xbf16>
    %66 = vector.shape_cast %63 : vector<16x8xbf16> to vector<1x16x8xbf16>
    tpu.vector_store %arg4[%c8, %c0_38, %c0_39], %66 {strides = array<i32>} : memref<12x16x8xbf16, #tpu.memory_space<vmem>>, vector<1x16x8xbf16>,
    %67 = vector.extract_strided_slice %61 {offsets = [0, 8], sizes = [16, 8], strides = [1, 1]} : vector<16x32xf32> to vector<16x8xf32>
    %68 = arith.truncf %67 : vector<16x8xf32> to vector<16x8xbf16>
    %c9 = arith.constant 9 : index
    %c0_40 = arith.constant 0 : index
    %c0_41 = arith.constant 0 : index
    %69 = vector.load %arg4[%c9, %c0_40, %c0_41] : memref<12x16x8xbf16, #tpu.memory_space<vmem>>, vector<1x16x8xbf16>
    %70 = vector.shape_cast %69 : vector<1x16x8xbf16> to vector<16x8xbf16>
    %71 = vector.shape_cast %68 : vector<16x8xbf16> to vector<1x16x8xbf16>
    tpu.vector_store %arg4[%c9, %c0_40, %c0_41], %71 {strides = array<i32>} : memref<12x16x8xbf16, #tpu.memory_space<vmem>>, vector<1x16x8xbf16>,
    %72 = vector.extract_strided_slice %61 {offsets = [0, 16], sizes = [16, 8], strides = [1, 1]} : vector<16x32xf32> to vector<16x8xf32>
    %73 = arith.truncf %72 : vector<16x8xf32> to vector<16x8xbf16>
    %c10 = arith.constant 10 : index
    %c0_42 = arith.constant 0 : index
    %c0_43 = arith.constant 0 : index
    %74 = vector.load %arg4[%c10, %c0_42, %c0_43] : memref<12x16x8xbf16, #tpu.memory_space<vmem>>, vector<1x16x8xbf16>
    %75 = vector.shape_cast %74 : vector<1x16x8xbf16> to vector<16x8xbf16>
    %76 = vector.shape_cast %73 : vector<16x8xbf16> to vector<1x16x8xbf16>
    tpu.vector_store %arg4[%c10, %c0_42, %c0_43], %76 {strides = array<i32>} : memref<12x16x8xbf16, #tpu.memory_space<vmem>>, vector<1x16x8xbf16>,
    %77 = vector.extract_strided_slice %61 {offsets = [0, 24], sizes = [16, 8], strides = [1, 1]} : vector<16x32xf32> to vector<16x8xf32>
    %78 = arith.truncf %77 : vector<16x8xf32> to vector<16x8xbf16>
    %c11 = arith.constant 11 : index
    %c0_44 = arith.constant 0 : index
    %c0_45 = arith.constant 0 : index
    %79 = vector.load %arg4[%c11, %c0_44, %c0_45] : memref<12x16x8xbf16, #tpu.memory_space<vmem>>, vector<1x16x8xbf16>
    %80 = vector.shape_cast %79 : vector<1x16x8xbf16> to vector<16x8xbf16>
    %81 = vector.shape_cast %78 : vector<16x8xbf16> to vector<1x16x8xbf16>
    tpu.vector_store %arg4[%c11, %c0_44, %c0_45], %81 {strides = array<i32>} : memref<12x16x8xbf16, #tpu.memory_space<vmem>>, vector<1x16x8xbf16>,
    return
  }
  func.func @transform_0(%arg0: i32) -> (i32, i32) {
    %c0_i32 = arith.constant 0 : i32
    %c0_i32_0 = arith.constant 0 : i32
    return %arg0, %c0_i32 : i32, i32
  }
  func.func @transform_1(%arg0: i32) -> (i32, i32, i32) {
    %c0_i32 = arith.constant 0 : i32
    %c0_i32_0 = arith.constant 0 : i32
    %c0_i32_1 = arith.constant 0 : i32
    %c0_i32_2 = arith.constant 0 : i32
    return %c0_i32, %c0_i32_0, %c0_i32_1 : i32, i32, i32
  }
  func.func @transform_2(%arg0: i32) -> (i32, i32, i32) {
    %c0_i32 = arith.constant 0 : i32
    %c0_i32_0 = arith.constant 0 : i32
    %c0_i32_1 = arith.constant 0 : i32
    %c0_i32_2 = arith.constant 0 : i32
    return %c0_i32, %c0_i32_0, %c0_i32_1 : i32, i32, i32
  }
  func.func @transform_3(%arg0: i32) -> (i32, i32, i32) {
    %c0_i32 = arith.constant 0 : i32
    %c0_i32_0 = arith.constant 0 : i32
    %c0_i32_1 = arith.constant 0 : i32
    return %c0_i32, %arg0, %c0_i32_0 : i32, i32, i32
  }
}

module attributes {stable_mosaic.version = 11 : i64} {
  func.func @_attn_out_ln_kernel(%arg0: i32, %arg1: memref<4x16x8xbf16, #tpu.memory_space<vmem>>, %arg2: memref<4x8x32xbf16, #tpu.memory_space<vmem>>, %arg3: memref<1x32xf32, #tpu.memory_space<vmem>>, %arg4: memref<16x32xbf16, #tpu.memory_space<vmem>>, %arg5: memref<1x32xf32, #tpu.memory_space<vmem>>, %arg6: memref<1x32xf32, #tpu.memory_space<vmem>>, %arg7: memref<16x32xbf16, #tpu.memory_space<vmem>>) attributes {dimension_semantics = [#tpu.dimension_semantics<parallel>], iteration_bounds = array<i64: 1>, scalar_prefetch = 0 : i64, scratch_operands = 0 : i64, tpu.core_type = #tpu.core_type<tc>, window_params = [{transform_indices = @transform_0, window_bounds = array<i64: 4, 16, 8>}, {pipeline_mode = #tpu.pipeline_mode<synchronous>, transform_indices = @transform_1, window_bounds = array<i64: 4, 8, 32>}, {pipeline_mode = #tpu.pipeline_mode<synchronous>, transform_indices = @transform_2, window_bounds = array<i64: 1, 32>}, {transform_indices = @transform_3, window_bounds = array<i64: 16, 32>}, {pipeline_mode = #tpu.pipeline_mode<synchronous>, transform_indices = @transform_4, window_bounds = array<i64: 1, 32>}, {pipeline_mode = #tpu.pipeline_mode<synchronous>, transform_indices = @transform_5, window_bounds = array<i64: 1, 32>}, {transform_indices = @transform_6, window_bounds = array<i64: 16, 32>}]} {
    %c0 = arith.constant 0 : index
    %c0_0 = arith.constant 0 : index
    %0 = vector.load %arg4[%c0, %c0_0] : memref<16x32xbf16, #tpu.memory_space<vmem>>, vector<16x32xbf16>
    %1 = arith.extf %0 : vector<16x32xbf16> to vector<16x32xf32>
    %c0_1 = arith.constant 0 : index
    %c0_2 = arith.constant 0 : index
    %2 = vector.load %arg3[%c0_1, %c0_2] : memref<1x32xf32, #tpu.memory_space<vmem>>, vector<1x32xf32>
    %3 = vector.broadcast %2 : vector<1x32xf32> to vector<16x32xf32>
    %4 = arith.addf %1, %3 : vector<16x32xf32>
    %c0_3 = arith.constant 0 : index
    %c0_4 = arith.constant 0 : index
    %c0_5 = arith.constant 0 : index
    %5 = vector.load %arg1[%c0_3, %c0_4, %c0_5] : memref<4x16x8xbf16, #tpu.memory_space<vmem>>, vector<1x16x8xbf16>
    %6 = vector.shape_cast %5 : vector<1x16x8xbf16> to vector<16x8xbf16>
    %c0_6 = arith.constant 0 : index
    %c0_7 = arith.constant 0 : index
    %c0_8 = arith.constant 0 : index
    %7 = vector.load %arg2[%c0_6, %c0_7, %c0_8] : memref<4x8x32xbf16, #tpu.memory_space<vmem>>, vector<1x8x32xbf16>
    %8 = vector.shape_cast %7 : vector<1x8x32xbf16> to vector<8x32xbf16>
    %cst = arith.constant dense<0.000000e+00> : vector<16x32xf32>
    %9 = tpu.matmul %6, %8, %cst {dimension_numbers = #tpu.dot_dimension_numbers<[1], [0], [0], [1], [0, 0, 1, 1], [], []>} : vector<16x8xbf16>, vector<8x32xbf16>, vector<16x32xf32> -> vector<16x32xf32>
    %10 = arith.addf %4, %9 : vector<16x32xf32>
    %c1 = arith.constant 1 : index
    %c0_9 = arith.constant 0 : index
    %c0_10 = arith.constant 0 : index
    %11 = vector.load %arg1[%c1, %c0_9, %c0_10] : memref<4x16x8xbf16, #tpu.memory_space<vmem>>, vector<1x16x8xbf16>
    %12 = vector.shape_cast %11 : vector<1x16x8xbf16> to vector<16x8xbf16>
    %c1_11 = arith.constant 1 : index
    %c0_12 = arith.constant 0 : index
    %c0_13 = arith.constant 0 : index
    %13 = vector.load %arg2[%c1_11, %c0_12, %c0_13] : memref<4x8x32xbf16, #tpu.memory_space<vmem>>, vector<1x8x32xbf16>
    %14 = vector.shape_cast %13 : vector<1x8x32xbf16> to vector<8x32xbf16>
    %cst_14 = arith.constant dense<0.000000e+00> : vector<16x32xf32>
    %15 = tpu.matmul %12, %14, %cst_14 {dimension_numbers = #tpu.dot_dimension_numbers<[1], [0], [0], [1], [0, 0, 1, 1], [], []>} : vector<16x8xbf16>, vector<8x32xbf16>, vector<16x32xf32> -> vector<16x32xf32>
    %16 = arith.addf %10, %15 : vector<16x32xf32>
    %c2 = arith.constant 2 : index
    %c0_15 = arith.constant 0 : index
    %c0_16 = arith.constant 0 : index
    %17 = vector.load %arg1[%c2, %c0_15, %c0_16] : memref<4x16x8xbf16, #tpu.memory_space<vmem>>, vector<1x16x8xbf16>
    %18 = vector.shape_cast %17 : vector<1x16x8xbf16> to vector<16x8xbf16>
    %c2_17 = arith.constant 2 : index
    %c0_18 = arith.constant 0 : index
    %c0_19 = arith.constant 0 : index
    %19 = vector.load %arg2[%c2_17, %c0_18, %c0_19] : memref<4x8x32xbf16, #tpu.memory_space<vmem>>, vector<1x8x32xbf16>
    %20 = vector.shape_cast %19 : vector<1x8x32xbf16> to vector<8x32xbf16>
    %cst_20 = arith.constant dense<0.000000e+00> : vector<16x32xf32>
    %21 = tpu.matmul %18, %20, %cst_20 {dimension_numbers = #tpu.dot_dimension_numbers<[1], [0], [0], [1], [0, 0, 1, 1], [], []>} : vector<16x8xbf16>, vector<8x32xbf16>, vector<16x32xf32> -> vector<16x32xf32>
    %22 = arith.addf %16, %21 : vector<16x32xf32>
    %c3 = arith.constant 3 : index
    %c0_21 = arith.constant 0 : index
    %c0_22 = arith.constant 0 : index
    %23 = vector.load %arg1[%c3, %c0_21, %c0_22] : memref<4x16x8xbf16, #tpu.memory_space<vmem>>, vector<1x16x8xbf16>
    %24 = vector.shape_cast %23 : vector<1x16x8xbf16> to vector<16x8xbf16>
    %c3_23 = arith.constant 3 : index
    %c0_24 = arith.constant 0 : index
    %c0_25 = arith.constant 0 : index
    %25 = vector.load %arg2[%c3_23, %c0_24, %c0_25] : memref<4x8x32xbf16, #tpu.memory_space<vmem>>, vector<1x8x32xbf16>
    %26 = vector.shape_cast %25 : vector<1x8x32xbf16> to vector<8x32xbf16>
    %cst_26 = arith.constant dense<0.000000e+00> : vector<16x32xf32>
    %27 = tpu.matmul %24, %26, %cst_26 {dimension_numbers = #tpu.dot_dimension_numbers<[1], [0], [0], [1], [0, 0, 1, 1], [], []>} : vector<16x8xbf16>, vector<8x32xbf16>, vector<16x32xf32> -> vector<16x32xf32>
    %28 = arith.addf %22, %27 : vector<16x32xf32>
    %cst_27 = arith.constant dense<0.000000e+00> : vector<16xf32>
    %29 = vector.multi_reduction <add>, %28, %cst_27 [1] : vector<16x32xf32> to vector<16xf32>
    %30 = vector.shape_cast %29 : vector<16xf32> to vector<16x1xf32>
    %cst_28 = arith.constant 3.200000e+01 : f32
    %31 = vector.broadcast %cst_28 : f32 to vector<16x1xf32>
    %32 = arith.divf %30, %31 : vector<16x1xf32>
    %33 = vector.broadcast %32 : vector<16x1xf32> to vector<16x32xf32>
    %34 = arith.subf %28, %33 : vector<16x32xf32>
    %35 = arith.mulf %34, %34 : vector<16x32xf32>
    %cst_29 = arith.constant dense<0.000000e+00> : vector<16xf32>
    %36 = vector.multi_reduction <add>, %35, %cst_29 [1] : vector<16x32xf32> to vector<16xf32>
    %37 = vector.shape_cast %36 : vector<16xf32> to vector<16x1xf32>
    %cst_30 = arith.constant 3.200000e+01 : f32
    %38 = vector.broadcast %cst_30 : f32 to vector<16x1xf32>
    %39 = arith.divf %37, %38 : vector<16x1xf32>
    %40 = vector.broadcast %32 : vector<16x1xf32> to vector<16x32xf32>
    %41 = arith.subf %28, %40 : vector<16x32xf32>
    %cst_31 = arith.constant 9.99999996E-13 : f32
    %42 = vector.broadcast %cst_31 : f32 to vector<16x1xf32>
    %43 = arith.addf %39, %42 : vector<16x1xf32>
    %44 = math.rsqrt %43 : vector<16x1xf32>
    %45 = vector.broadcast %44 : vector<16x1xf32> to vector<16x32xf32>
    %46 = arith.mulf %41, %45 : vector<16x32xf32>
    %c0_32 = arith.constant 0 : index
    %c0_33 = arith.constant 0 : index
    %47 = vector.load %arg5[%c0_32, %c0_33] : memref<1x32xf32, #tpu.memory_space<vmem>>, vector<1x32xf32>
    %48 = vector.broadcast %47 : vector<1x32xf32> to vector<16x32xf32>
    %49 = arith.mulf %46, %48 : vector<16x32xf32>
    %c0_34 = arith.constant 0 : index
    %c0_35 = arith.constant 0 : index
    %50 = vector.load %arg6[%c0_34, %c0_35] : memref<1x32xf32, #tpu.memory_space<vmem>>, vector<1x32xf32>
    %51 = vector.broadcast %50 : vector<1x32xf32> to vector<16x32xf32>
    %52 = arith.addf %49, %51 : vector<16x32xf32>
    %53 = arith.truncf %52 : vector<16x32xf32> to vector<16x32xbf16>
    %c0_36 = arith.constant 0 : index
    %c0_37 = arith.constant 0 : index
    %54 = vector.load %arg7[%c0_36, %c0_37] : memref<16x32xbf16, #tpu.memory_space<vmem>>, vector<16x32xbf16>
    tpu.vector_store %arg7[%c0_36, %c0_37], %53 {strides = array<i32>} : memref<16x32xbf16, #tpu.memory_space<vmem>>, vector<16x32xbf16>,
    return
  }
  func.func @transform_0(%arg0: i32) -> (i32, i32, i32) {
    %c0_i32 = arith.constant 0 : i32
    %c0_i32_0 = arith.constant 0 : i32
    %c0_i32_1 = arith.constant 0 : i32
    return %c0_i32, %arg0, %c0_i32_0 : i32, i32, i32
  }
  func.func @transform_1(%arg0: i32) -> (i32, i32, i32) {
    %c0_i32 = arith.constant 0 : i32
    %c0_i32_0 = arith.constant 0 : i32
    %c0_i32_1 = arith.constant 0 : i32
    %c0_i32_2 = arith.constant 0 : i32
    return %c0_i32, %c0_i32_0, %c0_i32_1 : i32, i32, i32
  }
  func.func @transform_2(%arg0: i32) -> (i32, i32) {
    %c0_i32 = arith.constant 0 : i32
    %c0_i32_0 = arith.constant 0 : i32
    %c0_i32_1 = arith.constant 0 : i32
    return %c0_i32, %c0_i32_0 : i32, i32
  }
  func.func @transform_3(%arg0: i32) -> (i32, i32) {
    %c0_i32 = arith.constant 0 : i32
    %c0_i32_0 = arith.constant 0 : i32
    return %arg0, %c0_i32 : i32, i32
  }
  func.func @transform_4(%arg0: i32) -> (i32, i32) {
    %c0_i32 = arith.constant 0 : i32
    %c0_i32_0 = arith.constant 0 : i32
    %c0_i32_1 = arith.constant 0 : i32
    return %c0_i32, %c0_i32_0 : i32, i32
  }
  func.func @transform_5(%arg0: i32) -> (i32, i32) {
    %c0_i32 = arith.constant 0 : i32
    %c0_i32_0 = arith.constant 0 : i32
    %c0_i32_1 = arith.constant 0 : i32
    return %c0_i32, %c0_i32_0 : i32, i32
  }
  func.func @transform_6(%arg0: i32) -> (i32, i32) {
    %c0_i32 = arith.constant 0 : i32
    %c0_i32_0 = arith.constant 0 : i32
    return %arg0, %c0_i32 : i32, i32
  }
}

module attributes {stable_mosaic.version = 11 : i64} {
  func.func @_dense_kernel(%arg0: i32, %arg1: memref<16x32xbf16, #tpu.memory_space<vmem>>, %arg2: memref<32x64xbf16, #tpu.memory_space<vmem>>, %arg3: memref<1x64xf32, #tpu.memory_space<vmem>>, %arg4: memref<16x64xbf16, #tpu.memory_space<vmem>>) attributes {dimension_semantics = [#tpu.dimension_semantics<parallel>], iteration_bounds = array<i64: 1>, scalar_prefetch = 0 : i64, scratch_operands = 0 : i64, tpu.core_type = #tpu.core_type<tc>, window_params = [{transform_indices = @transform_0, window_bounds = array<i64: 16, 32>}, {pipeline_mode = #tpu.pipeline_mode<synchronous>, transform_indices = @transform_1, window_bounds = array<i64: 32, 64>}, {pipeline_mode = #tpu.pipeline_mode<synchronous>, transform_indices = @transform_2, window_bounds = array<i64: 1, 64>}, {transform_indices = @transform_3, window_bounds = array<i64: 16, 64>}]} {
    %c0 = arith.constant 0 : index
    %c0_0 = arith.constant 0 : index
    %0 = vector.load %arg1[%c0, %c0_0] : memref<16x32xbf16, #tpu.memory_space<vmem>>, vector<16x32xbf16>
    %c0_1 = arith.constant 0 : index
    %c0_2 = arith.constant 0 : index
    %1 = vector.load %arg2[%c0_1, %c0_2] : memref<32x64xbf16, #tpu.memory_space<vmem>>, vector<32x64xbf16>
    %cst = arith.constant dense<0.000000e+00> : vector<16x64xf32>
    %2 = tpu.matmul %0, %1, %cst {dimension_numbers = #tpu.dot_dimension_numbers<[1], [0], [0], [1], [0, 0, 1, 1], [], []>} : vector<16x32xbf16>, vector<32x64xbf16>, vector<16x64xf32> -> vector<16x64xf32>
    %c0_3 = arith.constant 0 : index
    %c0_4 = arith.constant 0 : index
    %3 = vector.load %arg3[%c0_3, %c0_4] : memref<1x64xf32, #tpu.memory_space<vmem>>, vector<1x64xf32>
    %4 = vector.broadcast %3 : vector<1x64xf32> to vector<16x64xf32>
    %5 = arith.addf %2, %4 : vector<16x64xf32>
    %cst_5 = arith.constant 5.000000e-01 : f32
    %6 = vector.broadcast %cst_5 : f32 to vector<16x64xf32>
    %7 = arith.mulf %6, %5 : vector<16x64xf32>
    %cst_6 = arith.constant 4.471500e-02 : f32
    %8 = vector.broadcast %cst_6 : f32 to vector<16x64xf32>
    %9 = arith.mulf %8, %5 : vector<16x64xf32>
    %10 = arith.mulf %9, %5 : vector<16x64xf32>
    %11 = arith.mulf %10, %5 : vector<16x64xf32>
    %12 = arith.addf %5, %11 : vector<16x64xf32>
    %cst_7 = arith.constant 0.797884583 : f32
    %13 = vector.broadcast %cst_7 : f32 to vector<16x64xf32>
    %14 = arith.mulf %13, %12 : vector<16x64xf32>
    %15 = math.tanh %14 : vector<16x64xf32>
    %cst_8 = arith.constant 1.000000e+00 : f32
    %16 = vector.broadcast %cst_8 : f32 to vector<16x64xf32>
    %17 = arith.addf %16, %15 : vector<16x64xf32>
    %18 = arith.mulf %7, %17 : vector<16x64xf32>
    %19 = arith.truncf %18 : vector<16x64xf32> to vector<16x64xbf16>
    %c0_9 = arith.constant 0 : index
    %c0_10 = arith.constant 0 : index
    %20 = vector.load %arg4[%c0_9, %c0_10] : memref<16x64xbf16, #tpu.memory_space<vmem>>, vector<16x64xbf16>
    tpu.vector_store %arg4[%c0_9, %c0_10], %19 {strides = array<i32>} : memref<16x64xbf16, #tpu.memory_space<vmem>>, vector<16x64xbf16>,
    return
  }
  func.func @transform_0(%arg0: i32) -> (i32, i32) {
    %c0_i32 = arith.constant 0 : i32
    %c0_i32_0 = arith.constant 0 : i32
    return %arg0, %c0_i32 : i32, i32
  }
  func.func @transform_1(%arg0: i32) -> (i32, i32) {
    %c0_i32 = arith.constant 0 : i32
    %c0_i32_0 = arith.constant 0 : i32
    %c0_i32_1 = arith.constant 0 : i32
    return %c0_i32, %c0_i32_0 : i32, i32
  }
  func.func @transform_2(%arg0: i32) -> (i32, i32) {
    %c0_i32 = arith.constant 0 : i32
    %c0_i32_0 = arith.constant 0 : i32
    %c0_i32_1 = arith.constant 0 : i32
    return %c0_i32, %c0_i32_0 : i32, i32
  }
  func.func @transform_3(%arg0: i32) -> (i32, i32) {
    %c0_i32 = arith.constant 0 : i32
    %c0_i32_0 = arith.constant 0 : i32
    return %arg0, %c0_i32 : i32, i32
  }
}

module attributes {stable_mosaic.version = 11 : i64} {
  func.func @_dense_ln_mask_kernel(%arg0: i32, %arg1: memref<16x64xbf16, #tpu.memory_space<vmem>>, %arg2: memref<64x32xbf16, #tpu.memory_space<vmem>>, %arg3: memref<1x32xf32, #tpu.memory_space<vmem>>, %arg4: memref<16x32xbf16, #tpu.memory_space<vmem>>, %arg5: memref<1x32xf32, #tpu.memory_space<vmem>>, %arg6: memref<1x32xf32, #tpu.memory_space<vmem>>, %arg7: memref<16x1xf32, #tpu.memory_space<vmem>>, %arg8: memref<16x32xbf16, #tpu.memory_space<vmem>>) attributes {dimension_semantics = [#tpu.dimension_semantics<parallel>], iteration_bounds = array<i64: 1>, scalar_prefetch = 0 : i64, scratch_operands = 0 : i64, tpu.core_type = #tpu.core_type<tc>, window_params = [{transform_indices = @transform_0, window_bounds = array<i64: 16, 64>}, {pipeline_mode = #tpu.pipeline_mode<synchronous>, transform_indices = @transform_1, window_bounds = array<i64: 64, 32>}, {pipeline_mode = #tpu.pipeline_mode<synchronous>, transform_indices = @transform_2, window_bounds = array<i64: 1, 32>}, {transform_indices = @transform_3, window_bounds = array<i64: 16, 32>}, {pipeline_mode = #tpu.pipeline_mode<synchronous>, transform_indices = @transform_4, window_bounds = array<i64: 1, 32>}, {pipeline_mode = #tpu.pipeline_mode<synchronous>, transform_indices = @transform_5, window_bounds = array<i64: 1, 32>}, {transform_indices = @transform_6, window_bounds = array<i64: 16, 1>}, {transform_indices = @transform_7, window_bounds = array<i64: 16, 32>}]} {
    %c0 = arith.constant 0 : index
    %c0_0 = arith.constant 0 : index
    %0 = vector.load %arg1[%c0, %c0_0] : memref<16x64xbf16, #tpu.memory_space<vmem>>, vector<16x64xbf16>
    %c0_1 = arith.constant 0 : index
    %c0_2 = arith.constant 0 : index
    %1 = vector.load %arg2[%c0_1, %c0_2] : memref<64x32xbf16, #tpu.memory_space<vmem>>, vector<64x32xbf16>
    %cst = arith.constant dense<0.000000e+00> : vector<16x32xf32>
    %2 = tpu.matmul %0, %1, %cst {dimension_numbers = #tpu.dot_dimension_numbers<[1], [0], [0], [1], [0, 0, 1, 1], [], []>} : vector<16x64xbf16>, vector<64x32xbf16>, vector<16x32xf32> -> vector<16x32xf32>
    %c0_3 = arith.constant 0 : index
    %c0_4 = arith.constant 0 : index
    %3 = vector.load %arg3[%c0_3, %c0_4] : memref<1x32xf32, #tpu.memory_space<vmem>>, vector<1x32xf32>
    %4 = vector.broadcast %3 : vector<1x32xf32> to vector<16x32xf32>
    %5 = arith.addf %2, %4 : vector<16x32xf32>
    %c0_5 = arith.constant 0 : index
    %c0_6 = arith.constant 0 : index
    %6 = vector.load %arg4[%c0_5, %c0_6] : memref<16x32xbf16, #tpu.memory_space<vmem>>, vector<16x32xbf16>
    %7 = arith.extf %6 : vector<16x32xbf16> to vector<16x32xf32>
    %8 = arith.addf %5, %7 : vector<16x32xf32>
    %cst_7 = arith.constant dense<0.000000e+00> : vector<16xf32>
    %9 = vector.multi_reduction <add>, %8, %cst_7 [1] : vector<16x32xf32> to vector<16xf32>
    %10 = vector.shape_cast %9 : vector<16xf32> to vector<16x1xf32>
    %cst_8 = arith.constant 3.200000e+01 : f32
    %11 = vector.broadcast %cst_8 : f32 to vector<16x1xf32>
    %12 = arith.divf %10, %11 : vector<16x1xf32>
    %13 = vector.broadcast %12 : vector<16x1xf32> to vector<16x32xf32>
    %14 = arith.subf %8, %13 : vector<16x32xf32>
    %15 = arith.mulf %14, %14 : vector<16x32xf32>
    %cst_9 = arith.constant dense<0.000000e+00> : vector<16xf32>
    %16 = vector.multi_reduction <add>, %15, %cst_9 [1] : vector<16x32xf32> to vector<16xf32>
    %17 = vector.shape_cast %16 : vector<16xf32> to vector<16x1xf32>
    %cst_10 = arith.constant 3.200000e+01 : f32
    %18 = vector.broadcast %cst_10 : f32 to vector<16x1xf32>
    %19 = arith.divf %17, %18 : vector<16x1xf32>
    %20 = vector.broadcast %12 : vector<16x1xf32> to vector<16x32xf32>
    %21 = arith.subf %8, %20 : vector<16x32xf32>
    %cst_11 = arith.constant 9.99999996E-13 : f32
    %22 = vector.broadcast %cst_11 : f32 to vector<16x1xf32>
    %23 = arith.addf %19, %22 : vector<16x1xf32>
    %24 = math.rsqrt %23 : vector<16x1xf32>
    %25 = vector.broadcast %24 : vector<16x1xf32> to vector<16x32xf32>
    %26 = arith.mulf %21, %25 : vector<16x32xf32>
    %c0_12 = arith.constant 0 : index
    %c0_13 = arith.constant 0 : index
    %27 = vector.load %arg5[%c0_12, %c0_13] : memref<1x32xf32, #tpu.memory_space<vmem>>, vector<1x32xf32>
    %28 = vector.broadcast %27 : vector<1x32xf32> to vector<16x32xf32>
    %29 = arith.mulf %26, %28 : vector<16x32xf32>
    %c0_14 = arith.constant 0 : index
    %c0_15 = arith.constant 0 : index
    %30 = vector.load %arg6[%c0_14, %c0_15] : memref<1x32xf32, #tpu.memory_space<vmem>>, vector<1x32xf32>
    %31 = vector.broadcast %30 : vector<1x32xf32> to vector<16x32xf32>
    %32 = arith.addf %29, %31 : vector<16x32xf32>
    %c0_16 = arith.constant 0 : index
    %c0_17 = arith.constant 0 : index
    %33 = vector.load %arg7[%c0_16, %c0_17] : memref<16x1xf32, #tpu.memory_space<vmem>>, vector<16x1xf32>
    %34 = vector.broadcast %33 : vector<16x1xf32> to vector<16x32xf32>
    %35 = arith.mulf %32, %34 : vector<16x32xf32>
    %36 = arith.truncf %35 : vector<16x32xf32> to vector<16x32xbf16>
    %c0_18 = arith.constant 0 : index
    %c0_19 = arith.constant 0 : index
    %37 = vector.load %arg8[%c0_18, %c0_19] : memref<16x32xbf16, #tpu.memory_space<vmem>>, vector<16x32xbf16>
    tpu.vector_store %arg8[%c0_18, %c0_19], %36 {strides = array<i32>} : memref<16x32xbf16, #tpu.memory_space<vmem>>, vector<16x32xbf16>,
    return
  }
  func.func @transform_0(%arg0: i32) -> (i32, i32) {
    %c0_i32 = arith.constant 0 : i32
    %c0_i32_0 = arith.constant 0 : i32
    return %arg0, %c0_i32 : i32, i32
  }
  func.func @transform_1(%arg0: i32) -> (i32, i32) {
    %c0_i32 = arith.constant 0 : i32
    %c0_i32_0 = arith.constant 0 : i32
    %c0_i32_1 = arith.constant 0 : i32
    return %c0_i32, %c0_i32_0 : i32, i32
  }
  func.func @transform_2(%arg0: i32) -> (i32, i32) {
    %c0_i32 = arith.constant 0 : i32
    %c0_i32_0 = arith.constant 0 : i32
    %c0_i32_1 = arith.constant 0 : i32
    return %c0_i32, %c0_i32_0 : i32, i32
  }
  func.func @transform_3(%arg0: i32) -> (i32, i32) {
    %c0_i32 = arith.constant 0 : i32
    %c0_i32_0 = arith.constant 0 : i32
    return %arg0, %c0_i32 : i32, i32
  }
  func.func @transform_4(%arg0: i32) -> (i32, i32) {
    %c0_i32 = arith.constant 0 : i32
    %c0_i32_0 = arith.constant 0 : i32
    %c0_i32_1 = arith.constant 0 : i32
    return %c0_i32, %c0_i32_0 : i32, i32
  }
  func.func @transform_5(%arg0: i32) -> (i32, i32) {
    %c0_i32 = arith.constant 0 : i32
    %c0_i32_0 = arith.constant 0 : i32
    %c0_i32_1 = arith.constant 0 : i32
    return %c0_i32, %c0_i32_0 : i32, i32
  }
  func.func @transform_6(%arg0: i32) -> (i32, i32) {
    %c0_i32 = arith.constant 0 : i32
    %c0_i32_0 = arith.constant 0 : i32
    return %arg0, %c0_i32 : i32, i32
  }
  func.func @transform_7(%arg0: i32) -> (i32, i32) {
    %c0_i32 = arith.constant 0 : i32
    %c0_i32_0 = arith.constant 0 : i32
    return %arg0, %c0_i32 : i32, i32
  }
}

</mosaic_0001>

<bundles_post_ra>
// kernel: bert_encoder.11
= control target key start
LH: loop header
LB: loop body
LE: loop exit
PB: predicated region body
PF: predicated region fallthrough
CT: control target
= control target key end

     0   :  { %s759_s15 = smov 0   ;;  %s761_s16 = smov 0   ;;  %s845_s0 = inlined_call_operand.vmem [shape: bf16[12,16,8], index: 0, kind: input, shape index: {}, may-alias: {0,1,2}]   ;;  %s846_s1 = inlined_call_operand.vmem [shape: bf16[12,16,8], index: 1, kind: input, shape index: {}, may-alias: {0,1,2}]   ;;  %s847_s2 = inlined_call_operand.vmem [shape: bf16[12,16,8], index: 2, kind: input, shape index: {}, may-alias: {0,1,2}]   ;;  %s848_s3 = inlined_call_operand.vmem [shape: f32[2,1,8], index: 3, kind: input, shape index: {}]   ;;  %s849_s4 = inlined_call_operand.vmem [shape: bf16[4,16,8], index: 4, kind: output, shape index: {}]  }
   0x1   :  { %s763_s17 = smov 0   ;;  %s765_s18 = smov 0  }
   0x2   :  { %s767_s19 = smov 0  }
   0x3 LB: > { %s36_s20 = sadd.s32 1, %s721_s17  ;;  %s40_s21 = sadd.s32 1, %s725_s18  ;;  %s729_s19 = sphi %s767_s19, %s14_s19   ;;  %s725_s18 = sphi %s765_s18, %s853_s18   ;;  %s721_s17 = sphi %s763_s17, %s852_s17   ;;  %s717_s16 = sphi %s761_s16, %s851_s16   ;;  %s713_s15 = sphi %s759_s15, %s850_s15  }
   0x4   : > { %p38_p0 = scmp.ge.s32.totalorder %s36_s20, 4  ;;  %p625_p1 = scmp.ge.s32.totalorder %s729_s19, 1 }
   0x5   : > { %p260_p2 = scmp.lt.s32.totalorder %s729_s19, 9 }
   0x6   : > { %s855_s20 = smov (%p38_p0, %s36_s20), 0  ;;  %s857_s21 = smov (!%p38_p0, %s40_s21), %s725_s18 }
   0x7   : > { %p261_p3 = pnand %p625_p1, %p260_p2  ;;  %p42_p4 = scmp.ge.s32.totalorder %s857_s21, 2 }
   0x8   : > { %p323_p5 = scmp.lt.s32.totalorder (!%p261_p3), %s717_s16, 1  ;;  %s330_s22 = sadd.s32 (!%p261_p3), 4, %s713_s15 }
   0x9   : > { %s859_s21 = smov (%p42_p4, %s857_s21), 0  ;;  %264 = sbr.rel (%p261_p3) target bundleno = 632 (0x278), region = 36 }
   0xa   : > { %p332_p6 = scmp.lt.s32.totalorder (!%p261_p3), %s330_s22, 11  ;;  %p321_p7 = scmp.lt.s32.totalorder (!%p261_p3), %s713_s15, 11 }
   0xb   : > { %s342_s13 = sadd.s32 (!%p261_p3), 8, %s713_s15  ;;  %p361_p9 = scmp.lt.s32.totalorder (!%p261_p3), %s713_s15, 3 }
   0xc   : > { %p344_p8 = scmp.lt.s32.totalorder (!%p261_p3), %s342_s13, 11 }
   0xe   : > { %s861_s16 = smov (!%p323_p5, %s717_s16), 1  ;;  %s863_s22 = smov (!%p332_p6, %s330_s22), 11  ;;  %vm378_vm0 = vcmask 64512   ;;  %vm375_vm1 = vcmask 7168   ;;  %v731_v3 = vmov -inf   ;;  %v732_v9 = vmov 0  }
   0xf   : > { %s322_s23 = scalar_select %p321_p7, %s713_s15, 11  ;;  %376 = vst.msk [vmem:[#allocation2] sm:$0xff] %vm375_vm1, %v731_v3  ;;  %681 = vset.pattern.permute.xlu0 %v732_v9  ;;  %682 = vset.pattern.permute.xlu1 %v732_v9  ;;  %v733_v10 = vmov 0.0   ;;  %vm442_vm2 = vcmask 1043456   ;;  %vm475_vm3 = vcmask 60416  }
  0x10   : > { %s628_s24 = sshll.u32 %s863_s22, 1  ;;  %s359_s27 = scalar_lea.vmem %s848_s3, %s861_s16  ;;  %683 = vset.pattern.permute.xlu2 %v732_v9  ;;  %377 = vst.msk [vmem:[#allocation3] sm:$0xff] %vm375_vm1, %v733_v10 }
  0x11   : > { %s337_s28 = sadd.s32 %s628_s24, %s861_s16  ;;  %s626_s29 = sshll.u32 %s322_s23, 1  ;;  %v684_v4 = vld [vmem:[%s359_s27] ss:$0 sm:$0xff]  ;;  %379 = vst.msk [vmem:[#allocation4] sm:$0xff] %vm378_vm0, %v733_v10 }
  0x12   : > { %s629_s30 = sshll.u32 %s337_s28, 2  ;;  %s326_s5 = sadd.s32 %s626_s29, %s861_s16 }
  0x13   : > { %s339_s8 = scalar_lea.vmem %s846_s1, %s629_s30  ;;  %s627_s9 = sshll.u32 %s326_s5, 2 }
  0x14   : > { %v381_v0 = vld [vmem:[%s339_s8] sm:$0xf]  ;;  %s328_s12 = scalar_lea.vmem %s845_s0, %s627_s9  ;;  %s865_s13 = smov (!%p344_p8, %s342_s13), 11 }
  0x15   : > { %v391_v1 = vsel %vm378_vm0, %v381_v0, 0  ;;  %v380_v2 = vld [vmem:[%s328_s12] sm:$0xf]  ;;  %s630_s14 = sshll.u32 %s865_s13, 1  ;;  %s867_s15 = smov (!%p361_p9, %s713_s15), 3 }
  0x16   : > { %400 = vmatpush.bf16.xpose.msra.mxu0 %v391_v1  ;;  %v406_v11 = vld [vmem:[#allocation2] sm:$0xff]  ;;  %s349_s22 = sadd.s32 %s630_s14, %s861_s16  ;;  %s632_s27 = sshll.u32 %s867_s15, 1 }
  0x17   : > { %s631_s23 = sshll.u32 %s349_s22, 2  ;;  %v422_v25 = vld [vmem:[#allocation3] sm:$0xff]  ;;  %s366_s28 = sadd.s32 %s632_s27, %s861_s16 }
  0x18   : > { %s351_s26 = scalar_lea.vmem %s847_s2, %s631_s23  ;;  %v430_v33 = vld [vmem:[#allocation4] sm:$0xff]  ;;  %s633_s29 = sshll.u32 %s366_s28, 2 }
  0x19   : > { %v438_v15 = vld [vmem:[%s351_s26] sm:$0xf]  ;;  %s368_s6 = scalar_lea.vmem %s849_s4, %s633_s29 }
  0x1a   : > { %v444_v16 = vsel %vm442_vm2, %v438_v15, 0 }
  0x1b   : > { %453 = vmatpush.bf16.msra.mxu1 %v444_v16 }
  0x1d   : > { %634 = vmatmul.msk.bf16.vlgmr.msra.gmra.mxu0 %vm378_vm0, %v380_v2 }
  0x9a   : > { %v402_v5 = vpop.f32.mrf.mxu0 }
  0x9b   : > { %v403_v6 = vadd.f32 %v684_v4, %v402_v5 }
  0x9d   : > { %v407_v7 = vsel %vm378_vm0, %v403_v6, -inf }
  0x9e   : > { %408 = vmax.xlane.f32.xlu0 %v407_v7 }
  0xa2   : > { %v404_v8 = vpop.f32.mrf.mxu0 }
 0x111   : > { %v409_v12 = vpop.xlane.xlu0 %408 }
 0x112   : > { %v410_v13 = vmax.f32 %v406_v11, %v409_v12 }
 0x114   : > { %v411_v14 = vsub.f32 %v406_v11, %v410_v13  ;;  %461 = vst.msk [vmem:[#allocation2] sm:$0xff] %vm375_vm1, %v410_v13  ;;  %416 = vperm.xlu0 %681, %v410_v13  }
 0x116   : > { %v412_v23 = vmul.f32 1.442695, %v411_v14 }
 0x186   : > { %v417_v17 = vpop.permute.xlu0 %416 }
 0x187   : > { %v419_v18 = vsub.f32 %v403_v6, %v417_v17 }
 0x189   : > { %v420_v19 = vmul.f32 1.442695, %v419_v18 }
 0x18b   : > { %685 = vpow2.f32 %v420_v19 }
 0x18c   : > { %687 = vpow2.f32 %v412_v23 }
 0x191   : > { %v686_v20 = vpop.eup %685 }
 0x192   : > { %v424_v21 = vsel %vm378_vm0, %v686_v20, 0.0  ;;  %v437_v22 = vpack.c.bf16 %v686_v20, %v686_v20  ;;  %v688_v24 = vpop.eup %687 }
 0x193   : > { %425 = vadd.xlane.f32.xlu1 %v424_v21  ;;  %v423_v26 = vmul.f32 %v688_v24, %v422_v25 }
 0x194   : > { %635 = vmatmul.msk.bf16.vlgmr.msra.gmra.mxu1 %vm378_vm0, %v437_v22 }
 0x1ac   : > { %433 = vperm.xlu1 %682, %v688_v24  }
 0x206   : > { %v426_v27 = vpop.xlane.xlu1 %425 }
 0x207   : > { %v427_v28 = vadd.f32 %v426_v27, %v423_v26 }
 0x209   : > { %429 = vst.msk [vmem:[#allocation3] sm:$0xff] %vm375_vm1, %v427_v28 }
 0x210   : > { %v466_v29 = vld [vmem:[#allocation3] sm:$0xff] }
 0x211   : > { %v455_v30 = vpop.f32.mrf.mxu1  ;;  %689 = vrcp.f32 %v466_v29 }
 0x217   : > { %v690_v31 = vpop.eup %689 }
 0x218   : > { %470 = vperm.xlu2 %683, %v690_v31  }
 0x219   : > { %v457_v32 = vpop.f32.mrf.mxu1 }
 0x21e   : > { %v434_v34 = vpop.permute.xlu1 %433 }
 0x21f   : > { %v436_v35 = vmul.f32 %v434_v34, %v430_v33 }
 0x221   : > { %v459_v36 = vadd.f32 %v455_v30, %v436_v35 }
 0x223   : > { %460 = vst.msk [vmem:[#allocation4] sm:$0xff] %vm378_vm0, %v459_v36 }
 0x22a   : > { %v465_v37 = vld [vmem:[#allocation4] sm:$0xff] }
 0x272   : > { %v471_v38 = vpop.permute.xlu2 %470 }
 0x273   : > { %v473_v39 = vmul.f32 %v471_v38, %v465_v37 }
 0x275   : > { %v474_v40 = vpack.c.bf16 %v473_v39, %v473_v39 }
 0x277   : > { %476 = vst.msk [vmem:[%s368_s6] sm:$0xf] %vm475_vm3, %v474_v40 }
 0x278 PF: > { %s14_s19 = sadd.s32 1, %s729_s19   ;;  %s850_s15 = smov %s721_s17 }
 0x279   : > { %p11_p10 = scmp.ge.s32.totalorder %s14_s19, 10   ;;  %s851_s16 = smov %s725_s18 }
 0x27a   : > { %s852_s17 = smov %s855_s20  ;;  %s853_s18 = smov %s859_s21 }
 0x27b   :  { %13 = sbr.rel (!%p11_p10) target bundleno = 3 (0x3), region = 83 }

// kernel: bert_encoder.13
= control target key start
LH: loop header
LB: loop body
LE: loop exit
PB: predicated region body
PF: predicated region fallthrough
CT: control target
= control target key end

     0   :  { %vm42_vm0 = vcmask 261120   ;;  %vm80_vm1 = vcmask 519168   ;;  %s146_s1 = inlined_call_operand.vmem [shape: bf16[32,64], index: 1, kind: input, shape index: {}]   ;;  %s147_s2 = inlined_call_operand.vmem [shape: f32[1,64], index: 2, kind: input, shape index: {}]   ;;  %s148_s0 = inlined_call_operand.vmem [shape: bf16[16,32], index: 0, kind: input, shape index: {}]   ;;  %s149_s3 = inlined_call_operand.vmem [shape: bf16[16,64], index: 3, kind: output, shape index: {}]  }
   0x1   :  { %v102_v0 = vld [vmem:[%s146_s1 + $0x8] sm:$0xff]  ;;  %v101_v1 = vld [vmem:[%s146_s1] sm:$0xff] }
   0x2   :  { %52 = vmatpush.bf16.msra.mxu0 %v102_v0  ;;  %v100_v2 = vld [vmem:[%s148_s0] sm:$0xff] }
   0x3   :  { %v103_v3 = vld [vmem:[%s147_s2] ss:$0 sm:$0xff] }
   0x6   :  { %53 = vmatpush.bf16.msra.mxu0 %v101_v1 }
   0x9   :  { %99 = vmatmul.msk.bf16.vlgmr.msra.gmra.mxu0 %vm42_vm0, %v100_v2 }
  0x86   :  { %v55_v4 = vpop.f32.mrf.mxu0 }
  0x87   :  { %v56_v5 = vadd.f32 %v103_v3, %v55_v4 }
  0x89   :  { %v62_v6 = vmul.f32 0.044715, %v56_v5  ;;  %v60_v19 = vmul.f32 0.5, %v56_v5 }
  0x8b   :  { %v64_v7 = vmul.f32 %v62_v6, %v56_v5 }
  0x8d   :  { %v66_v8 = vmul.f32 %v64_v7, %v56_v5 }
  0x8e   :  { %v57_v9 = vpop.f32.mrf.mxu0 }
  0x8f   :  { %v68_v10 = vadd.f32 %v66_v8, %v56_v5  ;;  %v58_v11 = vadd.f32 %v103_v3, %v57_v9 }
  0x91   :  { %v70_v12 = vmul.f32 0.7978846, %v68_v10  ;;  %v63_v13 = vmul.f32 0.044715, %v58_v11  ;;  %v61_v24 = vmul.f32 0.5, %v58_v11 }
  0x93   :  { %104 = vtanh.f32 %v70_v12  ;;  %v65_v14 = vmul.f32 %v63_v13, %v58_v11 }
  0x95   :  { %v67_v15 = vmul.f32 %v65_v14, %v58_v11 }
  0x97   :  { %v69_v16 = vadd.f32 %v67_v15, %v58_v11 }
  0x99   :  { %v105_v17 = vpop.eup %104  ;;  %v71_v18 = vmul.f32 0.7978846, %v69_v16 }
  0x9a   :  { %v74_v20 = vadd.f32 1.0, %v105_v17 }
  0x9b   :  { %106 = vtanh.f32 %v71_v18 }
  0x9c   :  { %v76_v21 = vmul.f32 %v74_v20, %v60_v19 }
  0x9e   :  { %v78_v22 = vpack.c.bf16 %v76_v21, %v76_v21 }
  0xa0   :  { %81 = vst.msk [vmem:[%s149_s3] sm:$0xf] %vm80_vm1, %v78_v22 }
  0xa1   :  { %v107_v23 = vpop.eup %106 }
  0xa2   :  { %v75_v25 = vadd.f32 1.0, %v107_v23 }
  0xa4   :  { %v77_v26 = vmul.f32 %v75_v25, %v61_v24 }
  0xa6   :  { %v79_v27 = vpack.c.bf16 %v77_v26, %v77_v26 }
  0xa8   :  { %82 = vst.msk [vmem:[%s149_s3 + $0x4] sm:$0xf] %vm80_vm1, %v79_v27 }

// kernel: bert_encoder.12
= control target key start
LH: loop header
LB: loop body
LE: loop exit
PB: predicated region body
PF: predicated region fallthrough
CT: control target
= control target key end

     0   :  { %vm46_vm0 = vcmask 1043456   ;;  %vm42_vm1 = vcmask 64512   ;;  %vm162_vm2 = vcmask 261120   ;;  %v282_v36 = vmov 32.0   ;;  %s364_s1 = inlined_call_operand.vmem [shape: bf16[4,8,32], index: 1, kind: input, shape index: {}]   ;;  %s365_s0 = inlined_call_operand.vmem [shape: bf16[4,16,8], index: 0, kind: input, shape index: {}]   ;;  %s366_s2 = inlined_call_operand.vmem [shape: f32[1,32], index: 2, kind: input, shape index: {}]   ;;  %s367_s3 = inlined_call_operand.vmem [shape: bf16[16,32], index: 3, kind: input, shape index: {}]   ;;  %s368_s4 = inlined_call_operand.vmem [shape: f32[1,32], index: 4, kind: input, shape index: {}]   ;;  %s369_s5 = inlined_call_operand.vmem [shape: f32[1,32], index: 5, kind: input, shape index: {}]   ;;  %s370_s6 = inlined_call_operand.vmem [shape: bf16[16,32], index: 6, kind: output, shape index: {}]  }
   0x1   :  { %v36_v0 = vld [vmem:[%s364_s1] sm:$0xf]  ;;  %v242_v1 = vld [vmem:[%s364_s1 + $0x4] sm:$0xf]  ;;  %v250_v2 = vld [vmem:[%s364_s1 + $0x8] sm:$0xf]  ;;  %276 = vrcp.f32 %v282_v36 }
   0x2   :  { %v48_v3 = vsel %vm46_vm0, %v36_v0, 0  ;;  %v80_v4 = vsel %vm46_vm0, %v242_v1, 0  ;;  %v112_v5 = vsel %vm46_vm0, %v250_v2, 0  ;;  %v258_v6 = vld [vmem:[%s364_s1 + $0xc] sm:$0xf]  ;;  %v264_v7 = vld [vmem:[%s365_s0] sm:$0xff] }
   0x3   :  { %57 = vmatpush.bf16.msra.mxu0 %v48_v3  ;;  %89 = vmatpush.bf16.msra.mxu1 %v80_v4  ;;  %v144_v8 = vsel %vm46_vm0, %v258_v6, 0  ;;  %v265_v9 = vld [vmem:[%s365_s0 + $0x8] sm:$0xff]  ;;  %v266_v10 = vld [vmem:[%s365_s0 + $0x10] sm:$0xff]  ;;  %v267_v11 = vld [vmem:[%s365_s0 + $0x18] sm:$0xff]  ;;  %vm228_vm8 = vcmask 257024  }
   0x4   :  { %121 = vmatpush.bf16.msra.mxu2 %v112_v5  ;;  %153 = vmatpush.bf16.msra.mxu3 %v144_v8  ;;  %v269_v12 = vld [vmem:[%s367_s3] sm:$0xff]  }
   0x5   :  { %v270_v13 = vunpack.c.l.bf16 %v269_v12  ;;  %v273_v14 = vld [vmem:[%s366_s2] ss:$0 sm:$0xff]  ;;  %v271_v18 = vunpack.c.h.bf16 %v269_v12 }
   0x6   :  { %239 = vmatmul.msk.bf16.vlgmr.msra.gmra.mxu0 %vm42_vm1, %v264_v7  ;;  %247 = vmatmul.msk.bf16.vlgmr.msra.gmra.mxu1 %vm42_vm1, %v265_v9  ;;  %v274_v3 = vld [vmem:[%s368_s4] ss:$0 sm:$0xff] }
   0x7   :  { %255 = vmatmul.msk.bf16.vlgmr.msra.gmra.mxu2 %vm42_vm1, %v266_v10  ;;  %263 = vmatmul.msk.bf16.vlgmr.msra.gmra.mxu3 %vm42_vm1, %v267_v11  ;;  %v32_v15 = vadd.f32 %v273_v14, %v270_v13  ;;  %v33_v21 = vadd.f32 %v273_v14, %v271_v18  ;;  %v277_v37 = vpop.eup %276  ;;  %v275_v6 = vld [vmem:[%s369_s5] ss:$0 sm:$0xff] }
   0x8   :  { %v170_v38 = vmul.f32 32.0, %v277_v37  ;;  %vm174_vm3 = vweird.f32 %v277_v37 }
   0xa   :  { %v171_v39 = vsub.f32 1.0, %v170_v38 }
   0xc   :  { %v172_v40 = vmul.f32 %v277_v37, %v171_v39 }
   0xe   :  { %v173_v41 = vadd.f32 %v277_v37, %v172_v40 }
  0x10   :  { %v175_v42 = vsel %vm174_vm3, %v277_v37, %v173_v41 }
  0x83   :  { %v59_v16 = vpop.f32.mrf.mxu0  ;;  %v91_v19 = vpop.f32.mrf.mxu1 }
  0x84   :  { %v64_v17 = vadd.f32 %v59_v16, %v32_v15 }
  0x86   :  { %v96_v20 = vadd.f32 %v91_v19, %v64_v17 }
  0x8a   :  { %v123_v22 = vpop.f32.mrf.mxu2  ;;  %v155_v23 = vpop.f32.mrf.mxu3 }
  0x8b   :  { %v128_v24 = vadd.f32 %v123_v22, %v96_v20  ;;  %v61_v25 = vpop.f32.mrf.mxu0  ;;  %v93_v29 = vpop.f32.mrf.mxu1 }
  0x8c   :  { %v65_v27 = vadd.f32 %v61_v25, %v33_v21 }
  0x8d   :  { %v160_v26 = vadd.f32 %v155_v23, %v128_v24 }
  0x8e   :  { %v97_v30 = vadd.f32 %v93_v29, %v65_v27 }
  0x8f   :  { %v163_v28 = vsel %vm162_vm2, %v160_v26, 0.0 }
  0x90   :  { %164 = vadd.xlane.f32.xlu0 %v163_v28 }
  0x92   :  { %v125_v31 = vpop.f32.mrf.mxu2  ;;  %v157_v33 = vpop.f32.mrf.mxu3 }
  0x93   :  { %v129_v32 = vadd.f32 %v125_v31, %v97_v30 }
  0x95   :  { %v161_v34 = vadd.f32 %v157_v33, %v129_v32 }
  0x97   :  { %v166_v35 = vsel %vm162_vm2, %v161_v34, 0.0 }
  0x98   :  { %167 = vadd.xlane.f32.xlu0 %v166_v35 }
 0x103   :  { %v165_v43 = vpop.xlane.xlu0 %164 }
 0x104   :  { %v176_v44 = vmul.f32 %v175_v42, %v165_v43 }
 0x106   :  { %v178_v45 = vsub.f32 %v160_v26, %v176_v44 }
 0x108   :  { %v180_v46 = vmul.f32 %v178_v45, %v178_v45 }
 0x10a   :  { %v182_v47 = vsel %vm162_vm2, %v180_v46, 0.0 }
 0x10b   :  { %183 = vadd.xlane.f32.xlu1 %v182_v47  ;;  %v168_v48 = vpop.xlane.xlu0 %167 }
 0x10c   :  { %v177_v49 = vmul.f32 %v175_v42, %v168_v48 }
 0x10e   :  { %v179_v50 = vsub.f32 %v161_v34, %v177_v49 }
 0x110   :  { %v181_v51 = vmul.f32 %v179_v50, %v179_v50 }
 0x112   :  { %v185_v52 = vsel %vm162_vm2, %v181_v51, 0.0 }
 0x113   :  { %186 = vadd.xlane.f32.xlu1 %v185_v52 }
 0x17e   :  { %v184_v53 = vpop.xlane.xlu1 %183 }
 0x17f   :  { %v188_v54 = vmul.f32 %v184_v53, %v175_v42 }
 0x181   :  { %v190_v55 = vadd.f32 1e-12, %v188_v54 }
 0x183   :  { %278 = vrsqrt.f32 %v190_v55  ;;  %vm198_vm5 = vweird.f32 %v190_v55 }
 0x186   :  { %v187_v56 = vpop.xlane.xlu1 %186 }
 0x187   :  { %v189_v57 = vmul.f32 %v187_v56, %v175_v42 }
 0x189   :  { %v279_v58 = vpop.eup %278  ;;  %v191_v59 = vadd.f32 1e-12, %v189_v57 }
 0x18a   :  { %v193_v60 = vmul.f32 %v279_v58, %v190_v55  ;;  %vm199_vm4 = vweird.f32 %v279_v58 }
 0x18b   :  { %280 = vrsqrt.f32 %v191_v59  ;;  %vm200_vm6 = vmor %vm198_vm5, %vm199_vm4  ;;  %vm208_vm9 = vweird.f32 %v191_v59 }
 0x18c   :  { %v194_v61 = vmul.f32 %v279_v58, %v193_v60 }
 0x18e   :  { %v195_v62 = vmul.f32 0.5, %v194_v61 }
 0x190   :  { %v196_v63 = vsub.f32 1.5, %v195_v62 }
 0x191   :  { %v281_v0 = vpop.eup %280 }
 0x192   :  { %v197_v1 = vmul.f32 %v279_v58, %v196_v63  ;;  %v203_v2 = vmul.f32 %v281_v0, %v191_v59  ;;  %vm209_vm7 = vweird.f32 %v281_v0 }
 0x193   :  { %vm210_vm10 = vmor %vm208_vm9, %vm209_vm7 }
 0x194   :  { %v201_v4 = vsel %vm200_vm6, %v279_v58, %v197_v1  ;;  %v204_v5 = vmul.f32 %v281_v0, %v203_v2 }
 0x195   :  { %v212_v7 = vmul.f32 %v201_v4, %v178_v45 }
 0x196   :  { %v205_v8 = vmul.f32 0.5, %v204_v5 }
 0x197   :  { %v218_v9 = vmul.f32 %v274_v3, %v212_v7 }
 0x198   :  { %v206_v10 = vsub.f32 1.5, %v205_v8 }
 0x199   :  { %v224_v11 = vadd.f32 %v275_v6, %v218_v9 }
 0x19a   :  { %v207_v12 = vmul.f32 %v281_v0, %v206_v10 }
 0x19b   :  { %v226_v13 = vpack.c.bf16 %v224_v11, %v224_v11 }
 0x19c   :  { %v211_v14 = vsel %vm210_vm10, %v281_v0, %v207_v12 }
 0x19d   :  { %229 = vst.msk [vmem:[%s370_s6] sm:$0xf] %vm228_vm8, %v226_v13  ;;  %v213_v15 = vmul.f32 %v211_v14, %v179_v50 }
 0x19f   :  { %v219_v16 = vmul.f32 %v274_v3, %v213_v15 }
 0x1a1   :  { %v225_v17 = vadd.f32 %v275_v6, %v219_v16 }
 0x1a3   :  { %v227_v18 = vpack.c.bf16 %v225_v17, %v225_v17 }
 0x1a5   :  { %230 = vst.msk [vmem:[%s370_s6 + $0x4] sm:$0xf] %vm228_vm8, %v227_v18 }

// kernel: bert_encoder.10
= control target key start
LH: loop header
LB: loop body
LE: loop exit
PB: predicated region body
PF: predicated region fallthrough
CT: control target
= control target key end

     0   :  { %vm42_vm0 = vcmask 261120   ;;  %vm62_vm1 = vcmask 60416   ;;  %s314_s5 = smov 104   ;;  %s315_s6 = smov 112   ;;  %s475_s1 = inlined_call_operand.vmem [shape: bf16[3,32,32], index: 1, kind: input, shape index: {}]   ;;  %s476_s2 = inlined_call_operand.vmem [shape: f32[3,1,32], index: 2, kind: input, shape index: {}]   ;;  %s477_s0 = inlined_call_operand.vmem [shape: bf16[16,32], index: 0, kind: input, shape index: {}]   ;;  %s478_s3 = inlined_call_operand.vmem [shape: bf16[12,16,8], index: 3, kind: output, shape index: {}]  }
   0x1   :  { %v303_v0 = vld [vmem:[%s475_s1 + $0x8] sm:$0xff]  ;;  %v305_v1 = vld [vmem:[%s475_s1 + $0x18] sm:$0xff]  ;;  %v302_v3 = vld [vmem:[%s475_s1] sm:$0xff]  ;;  %s316_s9 = smov 120  }
   0x2   :  { %v307_v2 = vld [vmem:[%s475_s1 + $0x28] sm:$0xff]  ;;  %52 = vmatpush.bf16.msra.mxu0 %v303_v0  ;;  %122 = vmatpush.bf16.msra.mxu1 %v305_v1  ;;  %v304_v4 = vld [vmem:[%s475_s1 + $0x10] sm:$0xff]  ;;  %v306_v5 = vld [vmem:[%s475_s1 + $0x20] sm:$0xff] }
   0x3   :  { %192 = vmatpush.bf16.msra.mxu2 %v307_v2  ;;  %v301_v6 = vld [vmem:[%s477_s0] sm:$0xff] }
   0x4   :  { %v311_v7 = vld [vmem:[%s476_s2] ss:$0 sm:$0xff]  ;;  %v312_v8 = vld [vmem:[%s476_s2 + $0x1] ss:$0 sm:$0xff]  ;;  %v313_v15 = vld [vmem:[%s476_s2 + $0x2] ss:$0 sm:$0xff] }
   0x6   :  { %53 = vmatpush.bf16.msra.mxu0 %v302_v3  ;;  %123 = vmatpush.bf16.msra.mxu1 %v304_v4 }
   0x7   :  { %193 = vmatpush.bf16.msra.mxu2 %v306_v5 }
   0x9   :  { %250 = vmatmul.msk.bf16.vlgmr.msra.gmra.mxu0 %vm42_vm0, %v301_v6  ;;  %270 = vmatmul.msk.bf16.vlgmr.msra.gmra.mxu1 %vm42_vm0, %v301_v6 }
   0xa   :  { %292 = vmatmul.msk.bf16.vlgmr.msra.gmra.mxu2 %vm42_vm0, %v301_v6 }
  0x86   :  { %v55_v9 = vpop.f32.mrf.mxu0  ;;  %v125_v10 = vpop.f32.mrf.mxu1 }
  0x87   :  { %v56_v11 = vadd.f32 %v311_v7, %v55_v9  ;;  %v126_v12 = vadd.f32 %v312_v8, %v125_v10 }
  0x89   :  { %v60_v13 = vpack.c.bf16 %v56_v11, %v56_v11  ;;  %v130_v14 = vpack.c.bf16 %v126_v12, %v126_v12 }
  0x8b   :  { %63 = vst.msk [vmem:[%s478_s3] sm:$0xf] %vm62_vm1, %v60_v13  ;;  %85 = vrot.lane.b32.xlu2 %v60_v13, %s314_s5  ;;  %76 = vrot.lane.b32.xlu1 %v60_v13, %s315_s6 }
  0x8c   :  { %271 = vst.msk [vmem:[%s478_s3 + $0x20] sm:$0xf] %vm62_vm1, %v130_v14  ;;  %67 = vrot.lane.b32.xlu0 %v60_v13, %s316_s9 }
  0x8d   :  { %v195_v16 = vpop.f32.mrf.mxu2 }
  0x8e   :  { %v57_v17 = vpop.f32.mrf.mxu0  ;;  %v127_v18 = vpop.f32.mrf.mxu1  ;;  %v196_v19 = vadd.f32 %v313_v15, %v195_v16 }
  0x8f   :  { %v58_v20 = vadd.f32 %v311_v7, %v57_v17  ;;  %v128_v21 = vadd.f32 %v312_v8, %v127_v18 }
  0x90   :  { %v200_v22 = vpack.c.bf16 %v196_v19, %v196_v19 }
  0x91   :  { %v61_v23 = vpack.c.bf16 %v58_v20, %v58_v20  ;;  %v131_v24 = vpack.c.bf16 %v128_v21, %v128_v21 }
  0x92   :  { %293 = vst.msk [vmem:[%s478_s3 + $0x40] sm:$0xf] %vm62_vm1, %v200_v22 }
  0x93   :  { %64 = vst.msk [vmem:[%s478_s3 + $0x4] sm:$0xf] %vm62_vm1, %v61_v23  ;;  %146 = vrot.lane.b32.xlu2 %v130_v14, %s315_s6  ;;  %155 = vrot.lane.b32.xlu1 %v130_v14, %s314_s5 }
  0x94   :  { %272 = vst.msk [vmem:[%s478_s3 + $0x24] sm:$0xf] %vm62_vm1, %v131_v24  ;;  %137 = vrot.lane.b32.xlu0 %v130_v14, %s316_s9 }
  0x95   :  { %v197_v25 = vpop.f32.mrf.mxu2 }
  0x96   :  { %v198_v26 = vadd.f32 %v313_v15, %v197_v25 }
  0x98   :  { %v201_v27 = vpack.c.bf16 %v198_v26, %v198_v26 }
  0x9a   :  { %294 = vst.msk [vmem:[%s478_s3 + $0x44] sm:$0xf] %vm62_vm1, %v201_v27 }
  0x9b   :  { %216 = vrot.lane.b32.xlu2 %v200_v22, %s315_s6  ;;  %78 = vrot.lane.b32.xlu1 %v61_v23, %s315_s6 }
  0x9c   :  { %207 = vrot.lane.b32.xlu0 %v200_v22, %s316_s9 }
  0xa3   :  { %87 = vrot.lane.b32.xlu2 %v61_v23, %s314_s5  ;;  %139 = vrot.lane.b32.xlu1 %v131_v24, %s316_s9 }
  0xa4   :  { %69 = vrot.lane.b32.xlu0 %v61_v23, %s316_s9 }
  0xab   :  { %157 = vrot.lane.b32.xlu2 %v131_v24, %s314_s5  ;;  %209 = vrot.lane.b32.xlu1 %v201_v27, %s316_s9 }
  0xac   :  { %148 = vrot.lane.b32.xlu0 %v131_v24, %s315_s6 }
  0xb3   :  { %227 = vrot.lane.b32.xlu2 %v201_v27, %s314_s5  ;;  %225 = vrot.lane.b32.xlu1 %v200_v22, %s314_s5 }
  0xb4   :  { %218 = vrot.lane.b32.xlu0 %v201_v27, %s315_s6 }
  0xe5   :  { %v86_v28 = vpop.permute.xlu2 %85 }
  0xe6   :  { %255 = vst.msk [vmem:[%s478_s3 + $0x18] sm:$0xf] %vm62_vm1, %v86_v28 }
  0xed   :  { %v147_v29 = vpop.permute.xlu2 %146 }
  0xee   :  { %275 = vst.msk [vmem:[%s478_s3 + $0x30] sm:$0xf] %vm62_vm1, %v147_v29 }
  0xf5   :  { %v217_v30 = vpop.permute.xlu2 %216 }
  0xf6   :  { %297 = vst.msk [vmem:[%s478_s3 + $0x50] sm:$0xf] %vm62_vm1, %v217_v30 }
  0xfd   :  { %v88_v31 = vpop.permute.xlu2 %87  ;;  %v77_v32 = vpop.permute.xlu1 %76 }
  0xfe   :  { %256 = vst.msk [vmem:[%s478_s3 + $0x1c] sm:$0xf] %vm62_vm1, %v88_v31  ;;  %v68_v33 = vpop.permute.xlu0 %67 }
  0xff   :  { %253 = vst.msk [vmem:[%s478_s3 + $0x10] sm:$0xf] %vm62_vm1, %v77_v32 }
 0x100   :  { %251 = vst.msk [vmem:[%s478_s3 + $0x8] sm:$0xf] %vm62_vm1, %v68_v33 }
 0x105   :  { %v158_v34 = vpop.permute.xlu2 %157  ;;  %v156_v35 = vpop.permute.xlu1 %155 }
 0x106   :  { %278 = vst.msk [vmem:[%s478_s3 + $0x3c] sm:$0xf] %vm62_vm1, %v158_v34  ;;  %v138_v36 = vpop.permute.xlu0 %137 }
 0x107   :  { %277 = vst.msk [vmem:[%s478_s3 + $0x38] sm:$0xf] %vm62_vm1, %v156_v35 }
 0x108   :  { %273 = vst.msk [vmem:[%s478_s3 + $0x28] sm:$0xf] %vm62_vm1, %v138_v36 }
 0x10d   :  { %v228_v37 = vpop.permute.xlu2 %227  ;;  %v79_v38 = vpop.permute.xlu1 %78 }
 0x10e   :  { %300 = vst.msk [vmem:[%s478_s3 + $0x5c] sm:$0xf] %vm62_vm1, %v228_v37  ;;  %v208_v39 = vpop.permute.xlu0 %207 }
 0x10f   :  { %254 = vst.msk [vmem:[%s478_s3 + $0x14] sm:$0xf] %vm62_vm1, %v79_v38 }
 0x110   :  { %295 = vst.msk [vmem:[%s478_s3 + $0x48] sm:$0xf] %vm62_vm1, %v208_v39 }
 0x115   :  { %v140_v40 = vpop.permute.xlu1 %139 }
 0x116   :  { %274 = vst.msk [vmem:[%s478_s3 + $0x2c] sm:$0xf] %vm62_vm1, %v140_v40  ;;  %v70_v41 = vpop.permute.xlu0 %69 }
 0x117   :  { %252 = vst.msk [vmem:[%s478_s3 + $0xc] sm:$0xf] %vm62_vm1, %v70_v41 }
 0x11d   :  { %v210_v42 = vpop.permute.xlu1 %209 }
 0x11e   :  { %296 = vst.msk [vmem:[%s478_s3 + $0x4c] sm:$0xf] %vm62_vm1, %v210_v42  ;;  %v149_v43 = vpop.permute.xlu0 %148 }
 0x11f   :  { %276 = vst.msk [vmem:[%s478_s3 + $0x34] sm:$0xf] %vm62_vm1, %v149_v43 }
 0x125   :  { %v226_v44 = vpop.permute.xlu1 %225 }
 0x126   :  { %299 = vst.msk [vmem:[%s478_s3 + $0x58] sm:$0xf] %vm62_vm1, %v226_v44  ;;  %v219_v45 = vpop.permute.xlu0 %218 }
 0x127   :  { %298 = vst.msk [vmem:[%s478_s3 + $0x54] sm:$0xf] %vm62_vm1, %v219_v45 }

// kernel: bert_encoder.14
= control target key start
LH: loop header
LB: loop body
LE: loop exit
PB: predicated region body
PF: predicated region fallthrough
CT: control target
= control target key end

     0   :  { %vm70_vm0 = vcmask 523264   ;;  %vm94_vm1 = vcmask 261120   ;;  %v224_v17 = vmov 32.0   ;;  %v225_v21 = vmov 0   ;;  %s309_s1 = inlined_call_operand.vmem [shape: bf16[64,32], index: 1, kind: input, shape index: {}]   ;;  %s310_s2 = inlined_call_operand.vmem [shape: f32[1,32], index: 2, kind: input, shape index: {}]   ;;  %s311_s0 = inlined_call_operand.vmem [shape: bf16[16,64], index: 0, kind: input, shape index: {}]   ;;  %s312_s3 = inlined_call_operand.vmem [shape: bf16[16,32], index: 3, kind: input, shape index: {}]   ;;  %s313_s6 = inlined_call_operand.vmem [shape: f32[16,1], index: 6, kind: input, shape index: {}]   ;;  %s314_s4 = inlined_call_operand.vmem [shape: f32[1,32], index: 4, kind: input, shape index: {}]   ;;  %s315_s5 = inlined_call_operand.vmem [shape: f32[1,32], index: 5, kind: input, shape index: {}]   ;;  %s316_s7 = inlined_call_operand.vmem [shape: bf16[16,32], index: 7, kind: output, shape index: {}]  }
   0x1   :  { %v206_v0 = vld [vmem:[%s309_s1 + $0x18] sm:$0xff]  ;;  %v205_v1 = vld [vmem:[%s309_s1 + $0x10] sm:$0xff]  ;;  %v204_v2 = vld [vmem:[%s309_s1 + $0x8] sm:$0xff]  ;;  %218 = vrcp.f32 %v224_v17  ;;  %213 = vset.pattern.permute.xlu2 %v225_v21  ;;  %214 = vset.pattern.permute.xlu0 %v225_v21  ;;  %vm174_vm9 = vcmask 257024  }
   0x2   :  { %78 = vmatpush.bf16.msra.mxu0 %v206_v0  ;;  %v203_v3 = vld [vmem:[%s309_s1] sm:$0xff]  ;;  %v159_v24 = vld [vmem:[%s313_s6 + $0x8] sm:$0xff] }
   0x3   :  { %v202_v4 = vld [vmem:[%s311_s0] sm:$0xff] }
   0x4   :  { %v208_v5 = vld [vmem:[%s312_s3] sm:$0xff]  }
   0x5   :  { %v215_v6 = vld [vmem:[%s310_s2] ss:$0 sm:$0xff]  ;;  %v209_v7 = vunpack.c.l.bf16 %v208_v5  ;;  %v210_v12 = vunpack.c.h.bf16 %v208_v5 }
   0x6   :  { %79 = vmatpush.bf16.msra.mxu0 %v205_v1  ;;  %v158_v20 = vld [vmem:[%s313_s6] sm:$0xff] }
   0x7   :  { %v219_v18 = vpop.eup %218  ;;  %162 = vperm.xlu2 %213, %v158_v20   ;;  %v216_v51 = vld [vmem:[%s314_s4] ss:$0 sm:$0xff] }
   0x8   :  { %v102_v19 = vmul.f32 32.0, %v219_v18  ;;  %vm106_vm2 = vweird.f32 %v219_v18  ;;  %v217_v55 = vld [vmem:[%s315_s5] ss:$0 sm:$0xff] }
   0xa   :  { %80 = vmatpush.bf16.msra.mxu0 %v204_v2  ;;  %v103_v22 = vsub.f32 1.0, %v102_v19 }
   0xc   :  { %v104_v23 = vmul.f32 %v219_v18, %v103_v22 }
   0xe   :  { %81 = vmatpush.bf16.msra.mxu0 %v203_v3  ;;  %v105_v25 = vadd.f32 %v219_v18, %v104_v23 }
   0xf   :  { %167 = vperm.xlu2 %213, %v159_v24  }
  0x10   :  { %v107_v26 = vsel %vm106_vm2, %v219_v18, %v105_v25 }
  0x11   :  { %201 = vmatmul.msk.bf16.vlgmr.msra.gmra.mxu0 %vm70_vm0, %v202_v4 }
  0x61   :  { %v163_v59 = vpop.permute.xlu2 %162 }
  0x69   :  { %v168_v4 = vpop.permute.xlu2 %167 }
  0x8e   :  { %v83_v8 = vpop.f32.mrf.mxu0 }
  0x8f   :  { %v84_v9 = vadd.f32 %v215_v6, %v83_v8 }
  0x91   :  { %v92_v10 = vadd.f32 %v209_v7, %v84_v9 }
  0x93   :  { %v95_v11 = vsel %vm94_vm1, %v92_v10, 0.0 }
  0x94   :  { %96 = vadd.xlane.f32.xlu0 %v95_v11 }
  0x96   :  { %v85_v13 = vpop.f32.mrf.mxu0 }
  0x97   :  { %v86_v14 = vadd.f32 %v215_v6, %v85_v13 }
  0x99   :  { %v93_v15 = vadd.f32 %v210_v12, %v86_v14 }
  0x9b   :  { %v98_v16 = vsel %vm94_vm1, %v93_v15, 0.0 }
  0x9c   :  { %99 = vadd.xlane.f32.xlu0 %v98_v16 }
 0x107   :  { %v97_v27 = vpop.xlane.xlu0 %96 }
 0x108   :  { %v108_v28 = vmul.f32 %v107_v26, %v97_v27 }
 0x10a   :  { %v110_v29 = vsub.f32 %v92_v10, %v108_v28 }
 0x10c   :  { %v112_v30 = vmul.f32 %v110_v29, %v110_v29 }
 0x10e   :  { %v114_v31 = vsel %vm94_vm1, %v112_v30, 0.0 }
 0x10f   :  { %115 = vadd.xlane.f32.xlu1 %v114_v31  ;;  %v100_v32 = vpop.xlane.xlu0 %99 }
 0x110   :  { %v109_v33 = vmul.f32 %v107_v26, %v100_v32 }
 0x112   :  { %v111_v34 = vsub.f32 %v93_v15, %v109_v33 }
 0x114   :  { %v113_v35 = vmul.f32 %v111_v34, %v111_v34 }
 0x116   :  { %v117_v36 = vsel %vm94_vm1, %v113_v35, 0.0 }
 0x117   :  { %118 = vadd.xlane.f32.xlu1 %v117_v36 }
 0x182   :  { %v116_v37 = vpop.xlane.xlu1 %115 }
 0x183   :  { %v120_v38 = vmul.f32 %v116_v37, %v107_v26 }
 0x185   :  { %v122_v39 = vadd.f32 1e-12, %v120_v38 }
 0x187   :  { %220 = vrsqrt.f32 %v122_v39  ;;  %vm130_vm4 = vweird.f32 %v122_v39 }
 0x18a   :  { %v119_v40 = vpop.xlane.xlu1 %118 }
 0x18b   :  { %v121_v41 = vmul.f32 %v119_v40, %v107_v26 }
 0x18d   :  { %v221_v42 = vpop.eup %220  ;;  %v123_v43 = vadd.f32 1e-12, %v121_v41 }
 0x18e   :  { %v125_v44 = vmul.f32 %v221_v42, %v122_v39  ;;  %vm131_vm3 = vweird.f32 %v221_v42 }
 0x18f   :  { %222 = vrsqrt.f32 %v123_v43  ;;  %vm132_vm5 = vmor %vm130_vm4, %vm131_vm3  ;;  %vm140_vm7 = vweird.f32 %v123_v43 }
 0x190   :  { %v126_v45 = vmul.f32 %v221_v42, %v125_v44 }
 0x192   :  { %v127_v46 = vmul.f32 0.5, %v126_v45 }
 0x194   :  { %v128_v47 = vsub.f32 1.5, %v127_v46 }
 0x195   :  { %v223_v48 = vpop.eup %222 }
 0x196   :  { %v129_v49 = vmul.f32 %v221_v42, %v128_v47  ;;  %v135_v50 = vmul.f32 %v223_v48, %v123_v43  ;;  %vm141_vm6 = vweird.f32 %v223_v48 }
 0x197   :  { %vm142_vm8 = vmor %vm140_vm7, %vm141_vm6 }
 0x198   :  { %v136_v52 = vmul.f32 %v223_v48, %v135_v50  ;;  %v133_v53 = vsel %vm132_vm5, %v221_v42, %v129_v49 }
 0x199   :  { %v144_v54 = vmul.f32 %v133_v53, %v110_v29 }
 0x19a   :  { %v137_v56 = vmul.f32 0.5, %v136_v52 }
 0x19b   :  { %v150_v57 = vmul.f32 %v216_v51, %v144_v54 }
 0x19c   :  { %v138_v58 = vsub.f32 1.5, %v137_v56 }
 0x19d   :  { %v156_v60 = vadd.f32 %v217_v55, %v150_v57 }
 0x19e   :  { %v139_v61 = vmul.f32 %v223_v48, %v138_v58 }
 0x19f   :  { %v170_v62 = vmul.f32 %v163_v59, %v156_v60 }
 0x1a0   :  { %v143_v63 = vsel %vm142_vm8, %v223_v48, %v139_v61 }
 0x1a1   :  { %v172_v0 = vpack.c.bf16 %v170_v62, %v170_v62  ;;  %v145_v1 = vmul.f32 %v143_v63, %v111_v34 }
 0x1a3   :  { %175 = vst.msk [vmem:[%s316_s7] sm:$0xf] %vm174_vm9, %v172_v0  ;;  %v151_v2 = vmul.f32 %v216_v51, %v145_v1 }
 0x1a5   :  { %v157_v3 = vadd.f32 %v217_v55, %v151_v2 }
 0x1a7   :  { %v171_v5 = vmul.f32 %v168_v4, %v157_v3 }
 0x1a9   :  { %v173_v6 = vpack.c.bf16 %v171_v5, %v171_v5 }
 0x1ab   :  { %176 = vst.msk [vmem:[%s316_s7 + $0x4] sm:$0xf] %vm174_vm9, %v173_v6 }

</bundles_post_ra>
